<compile_context>
chip_gen: v6e
topology: v6e:2x2x1
jax: 0.10.0
libtpu: 0.0.40
codegen_flags: <defaults>
</compile_context>

<pallas_src>
import math
import functools

import jax
import jax.numpy as jnp
from jax.experimental import pallas as pl
from jax.experimental.pallas import tpu as pltpu


# ----------------------------------------------------------------------------
# Pallas kernel: the whole forward pass in one invocation, all operands VMEM
# resident (working set is a few KiB).
# ----------------------------------------------------------------------------
def _rnn_model_kernel(*refs, th):
    f32 = jnp.float32

    def dot(a, b):
        # Default MXU precision (documented choice, see module header);
        # validated against the HIGHEST-precision JAX reference at 2e-3.
        return jnp.dot(a, b, preferred_element_type=f32)

    if th > 0:
        (hist_sa_ref, ps_ref, fa_ref,
         wsa_ref, bsa_ref,          # fused [state|action] input proj (S+A -> F)
         ws_pad_ref, bs_ref,        # state_linear, lane-padded to (P, F) for feedback
         wa_ref, ba_ref,            # action_linear (A -> F), for future actions
         wih_ref, bih_ref,          # RNN input->hidden (F -> F)
         whh_ref, bhh_ref,          # RNN hidden->hidden (F -> F)
         who_ref, bho_ref,          # fused heads [wso | wr], lane-padded to P
         out_ref) = refs            # (Tf, Bp, P) time-major output slab
    else:
        (ps_ref, fa_ref,
         ws_pad_ref, bs_ref,
         wa_ref, ba_ref,
         wih_ref, bih_ref,
         whh_ref, bhh_ref,
         who_ref, bho_ref,
         out_ref) = refs

    Tf, Bp, P = out_ref.shape
    F = whh_ref.shape[0]

    ws_pad, bs = ws_pad_ref[...], bs_ref[...]
    wih, whh = wih_ref[...], whh_ref[...]
    brnn = bih_ref[...] + bhh_ref[...]      # fused RNN bias, computed once (off-chain)
    who, bho = who_ref[...], bho_ref[...]

    # --- history prefix: input projections batched over all time steps ------
    h = jnp.zeros((Bp, F), f32)
    if th > 0:
        hist_x = jnp.tanh(dot(hist_sa_ref[...], wsa_ref[...]) + bsa_ref[...])   # (Th*Bp, F)
        hist_xih = dot(hist_x, wih) + brnn                                      # (Th*Bp, F)
        # Only the h @ whh dot remains on the serial dependency chain.
        for t in range(th):
            h = jnp.tanh(hist_xih[t * Bp:(t + 1) * Bp, :] + dot(h, whh))

    # --- future rollout ------------------------------------------------------
    # All future-action features in one batched matmul (off the serial chain).
    fa_feat = dot(fa_ref[...], wa_ref[...]) + ba_ref[...]                       # (Tf*Bp, F)
    # Initial present-state feature: ps_ref is (Bp, P) zero lane-padded, so the
    # padded ws gives exactly present_s @ ws (no lane slicing anywhere).
    ps = dot(ps_ref[...], ws_pad) + bs                                          # (Bp, F)

    for i in range(Tf):
        x = jnp.tanh(ps + fa_feat[i * Bp:(i + 1) * Bp, :])                      # (Bp, F)
        # Two independent dots (no per-step lane concat on the chain).
        h = jnp.tanh(dot(x, wih) + dot(h, whh) + brnn)                          # (Bp, F)
        so = jnp.tanh(dot(h, who) + bho)                                        # (Bp, P) = [s | r | 0]
        out_ref[i] = so.astype(out_ref.dtype)                                   # full (8,128) store
        # Feedback: rows S..P-1 of ws_pad are zero, so the reward / padding
        # lanes of `so` contribute nothing -- identical to s @ ws + bs.
        ps = dot(so, ws_pad) + bs


def rnn_model_forward(history_s, history_a, present_s, future_a, params):
    """Wrapper calling the Pallas kernel. Returns (future_r, future_s)."""
    B, Th, S = history_s.shape
    A = history_a.shape[-1]
    Tf = future_a.shape[1]
    R = params["br"].shape[-1]
    F = params["whh"].shape[0]
    f32 = jnp.float32

    LANE, SUB = 128, 8
    Bp = ((B + SUB - 1) // SUB) * SUB                       # pad batch to sublane width
    P = ((S + R + LANE - 1) // LANE) * LANE                 # pad fused head to lane width

    # ---- parameter layout plumbing (pure layout, constant-folded under jit) -
    wsa = jnp.concatenate([params["ws"], params["wa"]], axis=0)        # (S+A, F)
    bsa = params["bs"] + params["ba"]                                  # (1, F)
    ws_pad = jnp.pad(params["ws"], ((0, P - S), (0, 0)))               # (P, F), rows S.. = 0
    who = jnp.concatenate([params["wso"], params["wr"]], axis=1)       # (F, S+R)
    bho = jnp.concatenate([params["bso"], params["br"]], axis=1)       # (1, S+R)
    who = jnp.pad(who, ((0, 0), (0, P - (S + R))))                     # (F, P)
    bho = jnp.pad(bho, ((0, 0), (0, P - (S + R))))                     # (1, P)

    # ---- input layout: time-major, batch zero-padded to Bp sublanes ---------
    def time_major_flat(x):                                            # (B, T, C) -> (T*Bp, C)
        T, C = x.shape[1], x.shape[2]
        x = jnp.transpose(x, (1, 0, 2))
        x = jnp.pad(x, ((0, 0), (0, Bp - B), (0, 0)))
        return x.reshape(T * Bp, C)

    fa = time_major_flat(future_a)                                     # (Tf*Bp, A)
    ps = jnp.pad(present_s, ((0, Bp - B), (0, P - S)))                 # (Bp, P), lane-padded

    if Th > 0:
        hist_sa = time_major_flat(
            jnp.concatenate([history_s, history_a], axis=-1))          # (Th*Bp, S+A)
        inputs = (hist_sa, ps, fa, wsa, bsa, ws_pad, params["bs"],
                  params["wa"], params["ba"],
                  params["wih"], params["bih"],
                  params["whh"], params["bhh"],
                  who, bho)
    else:
        inputs = (ps, fa, ws_pad, params["bs"],
                  params["wa"], params["ba"],
                  params["wih"], params["bih"],
                  params["whh"], params["bhh"],
                  who, bho)

    # ---- advisory cost estimate (scheduler hint for the tiny custom call) ---
    flops = (2 * Th * Bp * (S + A) * F          # history input proj
             + 2 * Th * Bp * F * F              # history x @ wih (batched)
             + 2 * Th * Bp * F * F              # history h @ whh (serial)
             + 2 * Tf * Bp * A * F              # future action proj
             + 2 * Bp * P * F                   # initial present_s proj
             + Tf * (4 * Bp * F * F             # cell: x@wih + h@whh
                     + 2 * Bp * F * P           # fused heads
                     + 2 * Bp * P * F))         # state feedback
    transcendentals = 2 * Th * Bp * F + Tf * (2 * Bp * F + Bp * P)
    bytes_accessed = (sum(int(x.size) * x.dtype.itemsize for x in inputs)
                      + Tf * Bp * P * 4)

    vmem = pl.BlockSpec(memory_space=pltpu.MemorySpace.VMEM)
    out = pl.pallas_call(
        functools.partial(_rnn_model_kernel, th=Th),
        out_shape=jax.ShapeDtypeStruct((Tf, Bp, P), f32),
        in_specs=[vmem] * len(inputs),
        out_specs=vmem,
        cost_estimate=pl.CostEstimate(flops=flops,
                                      transcendentals=transcendentals,
                                      bytes_accessed=bytes_accessed),
    )(*inputs)

    out = jnp.transpose(out, (1, 0, 2))          # (Bp, Tf, P)
    future_s = out[:B, :, :S]
    future_r = out[:B, :, S:S + R]
    return future_r, future_s


# ----------------------------------------------------------------------------
# Deterministic parameter construction (xavier_uniform weights, PyTorch-style
# uniform biases), all stored as (in, out) so kernels do x @ W.
# ----------------------------------------------------------------------------
def make_params(key, state_size, action_size, reward_size, feature_size):
    def xavier(key, fan_in, fan_out):
        limit = math.sqrt(6.0 / (fan_in + fan_out))
        return jax.random.uniform(key, (fan_in, fan_out), jnp.float32, -limit, limit)

    def bias(key, fan_in, size):
        b = 1.0 / math.sqrt(fan_in)
        return jax.random.uniform(key, (1, size), jnp.float32, -b, b)

    ks = jax.random.split(key, 12)
    return {
        "ws":  xavier(ks[0], state_size, feature_size),
        "bs":  bias(ks[1], state_size, feature_size),
        "wa":  xavier(ks[2], action_size, feature_size),
        "ba":  bias(ks[3], action_size, feature_size),
        "wih": xavier(ks[4], feature_size, feature_size),
        "bih": bias(ks[5], feature_size, feature_size),
        "whh": xavier(ks[6], feature_size, feature_size),
        "bhh": bias(ks[7], feature_size, feature_size),
        "wr":  xavier(ks[8], feature_size, reward_size),
        "br":  bias(ks[9], feature_size, reward_size),
        "wso": xavier(ks[10], feature_size, state_size),
        "bso": bias(ks[11], feature_size, state_size),
    }


# ----------------------------------------------------------------------------
# Pure-JAX reference mimicking the PyTorch forward literally (RNN re-run over
# the full growing sequence every iteration), used to validate the kernel.
# ----------------------------------------------------------------------------
def reference_forward(history_s, history_a, present_s, future_a, p):
    hi = jax.lax.Precision.HIGHEST

    def lin(x, w, b):
        return jnp.dot(x, w, precision=hi) + b

    hs = lin(history_s, p["ws"], p["bs"])
    ha = lin(history_a, p["wa"], p["ba"])
    seq = hs + ha                                      # (B, Th, F)
    ps = lin(present_s[:, None, :], p["ws"], p["bs"])  # (B, 1, F)
    fa = lin(future_a, p["wa"], p["ba"])               # (B, Tf, F)

    def run_rnn(x):  # x: (B, T, F), zero initial hidden, return last hidden
        B, T, F = x.shape
        h = jnp.zeros((B, F), jnp.float32)
        for t in range(T):
            h = jnp.tanh(lin(x[:, t, :], p["wih"], p["bih"]) +
                         lin(h, p["whh"], p["bhh"]))
        return h

    rs, ss = [], []
    for i in range(future_a.shape[1]):
        seq = jnp.concatenate([seq, ps + fa[:, i:i + 1]], axis=1)
        h_last = run_rnn(jnp.tanh(seq))
        r = jnp.tanh(lin(h_last, p["wr"], p["br"]))
        s = jnp.tanh(lin(h_last, p["wso"], p["bso"]))
        rs.append(r)
        ss.append(s)
        ps = lin(s[:, None, :], p["ws"], p["bs"])
    return jnp.stack(rs, axis=1), jnp.stack(ss, axis=1)


if __name__ == "__main__":
    # Small, module-consistent shapes.
    B, Th, Tf = 2, 6, 5
    state_size, action_size, reward_size, feature_size = 4, 3, 2, 32

    key = jax.random.PRNGKey(0)
    k_p, k_hs, k_ha, k_ps, k_fa = jax.random.split(key, 5)
    params = make_params(k_p, state_size, action_size, reward_size, feature_size)

    history_s = jax.random.normal(k_hs, (B, Th, state_size), jnp.float32)
    history_a = jax.random.normal(k_ha, (B, Th, action_size), jnp.float32)
    present_s = jax.random.normal(k_ps, (B, state_size), jnp.float32)
    future_a = jax.random.normal(k_fa, (B, Tf, action_size), jnp.float32)

    fwd = jax.jit(functools.partial(rnn_model_forward, params=params))
    future_r, future_s = fwd(history_s, history_a, present_s, future_a)
    jax.block_until_ready((future_r, future_s))

    ref_r, ref_s = reference_forward(history_s, history_a, present_s, future_a, params)

    assert future_r.shape == (B, Tf, reward_size)
    assert future_s.shape == (B, Tf, state_size)
    assert jnp.allclose(future_r, ref_r, atol=2e-3, rtol=2e-3)
    assert jnp.allclose(future_s, ref_s, atol=2e-3, rtol=2e-3)

    print("KERNEL_OK")
</pallas_src>

<mosaic_0001>
module attributes {stable_mosaic.version = 11 : i64} {
  func.func @_rnn_model_kernel(%arg0: memref<48x7xf32, #tpu.memory_space<vmem>>, %arg1: memref<8x128xf32, #tpu.memory_space<vmem>>, %arg2: memref<40x3xf32, #tpu.memory_space<vmem>>, %arg3: memref<7x32xf32, #tpu.memory_space<vmem>>, %arg4: memref<1x32xf32, #tpu.memory_space<vmem>>, %arg5: memref<128x32xf32, #tpu.memory_space<vmem>>, %arg6: memref<1x32xf32, #tpu.memory_space<vmem>>, %arg7: memref<3x32xf32, #tpu.memory_space<vmem>>, %arg8: memref<1x32xf32, #tpu.memory_space<vmem>>, %arg9: memref<32x32xf32, #tpu.memory_space<vmem>>, %arg10: memref<1x32xf32, #tpu.memory_space<vmem>>, %arg11: memref<32x32xf32, #tpu.memory_space<vmem>>, %arg12: memref<1x32xf32, #tpu.memory_space<vmem>>, %arg13: memref<32x128xf32, #tpu.memory_space<vmem>>, %arg14: memref<1x128xf32, #tpu.memory_space<vmem>>, %arg15: memref<5x8x128xf32, #tpu.memory_space<vmem>>) attributes {dimension_semantics = [], scalar_prefetch = 0 : i64, scratch_operands = 0 : i64, tpu.core_type = #tpu.core_type<tc>} {
    %c0 = arith.constant 0 : index
    %c0_0 = arith.constant 0 : index
    %0 = vector.load %arg5[%c0, %c0_0] : memref<128x32xf32, #tpu.memory_space<vmem>>, vector<128x32xf32>
    %c0_1 = arith.constant 0 : index
    %c0_2 = arith.constant 0 : index
    %1 = vector.load %arg6[%c0_1, %c0_2] : memref<1x32xf32, #tpu.memory_space<vmem>>, vector<1x32xf32>
    %c0_3 = arith.constant 0 : index
    %c0_4 = arith.constant 0 : index
    %2 = vector.load %arg9[%c0_3, %c0_4] : memref<32x32xf32, #tpu.memory_space<vmem>>, vector<32x32xf32>
    %c0_5 = arith.constant 0 : index
    %c0_6 = arith.constant 0 : index
    %3 = vector.load %arg11[%c0_5, %c0_6] : memref<32x32xf32, #tpu.memory_space<vmem>>, vector<32x32xf32>
    %c0_7 = arith.constant 0 : index
    %c0_8 = arith.constant 0 : index
    %4 = vector.load %arg10[%c0_7, %c0_8] : memref<1x32xf32, #tpu.memory_space<vmem>>, vector<1x32xf32>
    %c0_9 = arith.constant 0 : index
    %c0_10 = arith.constant 0 : index
    %5 = vector.load %arg12[%c0_9, %c0_10] : memref<1x32xf32, #tpu.memory_space<vmem>>, vector<1x32xf32>
    %6 = arith.addf %4, %5 : vector<1x32xf32>
    %c0_11 = arith.constant 0 : index
    %c0_12 = arith.constant 0 : index
    %7 = vector.load %arg13[%c0_11, %c0_12] : memref<32x128xf32, #tpu.memory_space<vmem>>, vector<32x128xf32>
    %c0_13 = arith.constant 0 : index
    %c0_14 = arith.constant 0 : index
    %8 = vector.load %arg14[%c0_13, %c0_14] : memref<1x128xf32, #tpu.memory_space<vmem>>, vector<1x128xf32>
    %cst = arith.constant 0.000000e+00 : f32
    %9 = vector.broadcast %cst : f32 to vector<8x32xf32>
    %c0_15 = arith.constant 0 : index
    %c0_16 = arith.constant 0 : index
    %10 = vector.load %arg0[%c0_15, %c0_16] : memref<48x7xf32, #tpu.memory_space<vmem>>, vector<48x7xf32>
    %c0_17 = arith.constant 0 : index
    %c0_18 = arith.constant 0 : index
    %11 = vector.load %arg3[%c0_17, %c0_18] : memref<7x32xf32, #tpu.memory_space<vmem>>, vector<7x32xf32>
    %cst_19 = arith.constant dense<0.000000e+00> : vector<48x32xf32>
    %12 = tpu.matmul %10, %11, %cst_19 {dimension_numbers = #tpu.dot_dimension_numbers<[1], [0], [0], [1], [0, 0, 1, 1], [], []>} : vector<48x7xf32>, vector<7x32xf32>, vector<48x32xf32> -> vector<48x32xf32>
    %c0_20 = arith.constant 0 : index
    %c0_21 = arith.constant 0 : index
    %13 = vector.load %arg4[%c0_20, %c0_21] : memref<1x32xf32, #tpu.memory_space<vmem>>, vector<1x32xf32>
    %14 = vector.broadcast %13 : vector<1x32xf32> to vector<48x32xf32>
    %15 = arith.addf %12, %14 : vector<48x32xf32>
    %16 = math.tanh %15 : vector<48x32xf32>
    %cst_22 = arith.constant dense<0.000000e+00> : vector<48x32xf32>
    %17 = tpu.matmul %16, %2, %cst_22 {dimension_numbers = #tpu.dot_dimension_numbers<[1], [0], [0], [1], [0, 0, 1, 1], [], []>} : vector<48x32xf32>, vector<32x32xf32>, vector<48x32xf32> -> vector<48x32xf32>
    %18 = vector.broadcast %6 : vector<1x32xf32> to vector<48x32xf32>
    %19 = arith.addf %17, %18 : vector<48x32xf32>
    %20 = vector.extract_strided_slice %19 {offsets = [0, 0], sizes = [8, 32], strides = [1, 1]} : vector<48x32xf32> to vector<8x32xf32>
    %cst_23 = arith.constant dense<0.000000e+00> : vector<8x32xf32>
    %21 = tpu.matmul %9, %3, %cst_23 {dimension_numbers = #tpu.dot_dimension_numbers<[1], [0], [0], [1], [0, 0, 1, 1], [], []>} : vector<8x32xf32>, vector<32x32xf32>, vector<8x32xf32> -> vector<8x32xf32>
    %22 = arith.addf %20, %21 : vector<8x32xf32>
    %23 = math.tanh %22 : vector<8x32xf32>
    %24 = vector.extract_strided_slice %19 {offsets = [8, 0], sizes = [8, 32], strides = [1, 1]} : vector<48x32xf32> to vector<8x32xf32>
    %cst_24 = arith.constant dense<0.000000e+00> : vector<8x32xf32>
    %25 = tpu.matmul %23, %3, %cst_24 {dimension_numbers = #tpu.dot_dimension_numbers<[1], [0], [0], [1], [0, 0, 1, 1], [], []>} : vector<8x32xf32>, vector<32x32xf32>, vector<8x32xf32> -> vector<8x32xf32>
    %26 = arith.addf %24, %25 : vector<8x32xf32>
    %27 = math.tanh %26 : vector<8x32xf32>
    %28 = vector.extract_strided_slice %19 {offsets = [16, 0], sizes = [8, 32], strides = [1, 1]} : vector<48x32xf32> to vector<8x32xf32>
    %cst_25 = arith.constant dense<0.000000e+00> : vector<8x32xf32>
    %29 = tpu.matmul %27, %3, %cst_25 {dimension_numbers = #tpu.dot_dimension_numbers<[1], [0], [0], [1], [0, 0, 1, 1], [], []>} : vector<8x32xf32>, vector<32x32xf32>, vector<8x32xf32> -> vector<8x32xf32>
    %30 = arith.addf %28, %29 : vector<8x32xf32>
    %31 = math.tanh %30 : vector<8x32xf32>
    %32 = vector.extract_strided_slice %19 {offsets = [24, 0], sizes = [8, 32], strides = [1, 1]} : vector<48x32xf32> to vector<8x32xf32>
    %cst_26 = arith.constant dense<0.000000e+00> : vector<8x32xf32>
    %33 = tpu.matmul %31, %3, %cst_26 {dimension_numbers = #tpu.dot_dimension_numbers<[1], [0], [0], [1], [0, 0, 1, 1], [], []>} : vector<8x32xf32>, vector<32x32xf32>, vector<8x32xf32> -> vector<8x32xf32>
    %34 = arith.addf %32, %33 : vector<8x32xf32>
    %35 = math.tanh %34 : vector<8x32xf32>
    %36 = vector.extract_strided_slice %19 {offsets = [32, 0], sizes = [8, 32], strides = [1, 1]} : vector<48x32xf32> to vector<8x32xf32>
    %cst_27 = arith.constant dense<0.000000e+00> : vector<8x32xf32>
    %37 = tpu.matmul %35, %3, %cst_27 {dimension_numbers = #tpu.dot_dimension_numbers<[1], [0], [0], [1], [0, 0, 1, 1], [], []>} : vector<8x32xf32>, vector<32x32xf32>, vector<8x32xf32> -> vector<8x32xf32>
    %38 = arith.addf %36, %37 : vector<8x32xf32>
    %39 = math.tanh %38 : vector<8x32xf32>
    %40 = vector.extract_strided_slice %19 {offsets = [40, 0], sizes = [8, 32], strides = [1, 1]} : vector<48x32xf32> to vector<8x32xf32>
    %cst_28 = arith.constant dense<0.000000e+00> : vector<8x32xf32>
    %41 = tpu.matmul %39, %3, %cst_28 {dimension_numbers = #tpu.dot_dimension_numbers<[1], [0], [0], [1], [0, 0, 1, 1], [], []>} : vector<8x32xf32>, vector<32x32xf32>, vector<8x32xf32> -> vector<8x32xf32>
    %42 = arith.addf %40, %41 : vector<8x32xf32>
    %43 = math.tanh %42 : vector<8x32xf32>
    %c0_29 = arith.constant 0 : index
    %c0_30 = arith.constant 0 : index
    %44 = vector.load %arg2[%c0_29, %c0_30] : memref<40x3xf32, #tpu.memory_space<vmem>>, vector<40x3xf32>
    %c0_31 = arith.constant 0 : index
    %c0_32 = arith.constant 0 : index
    %45 = vector.load %arg7[%c0_31, %c0_32] : memref<3x32xf32, #tpu.memory_space<vmem>>, vector<3x32xf32>
    %cst_33 = arith.constant dense<0.000000e+00> : vector<40x32xf32>
    %46 = tpu.matmul %44, %45, %cst_33 {dimension_numbers = #tpu.dot_dimension_numbers<[1], [0], [0], [1], [0, 0, 1, 1], [], []>} : vector<40x3xf32>, vector<3x32xf32>, vector<40x32xf32> -> vector<40x32xf32>
    %c0_34 = arith.constant 0 : index
    %c0_35 = arith.constant 0 : index
    %47 = vector.load %arg8[%c0_34, %c0_35] : memref<1x32xf32, #tpu.memory_space<vmem>>, vector<1x32xf32>
    %48 = vector.broadcast %47 : vector<1x32xf32> to vector<40x32xf32>
    %49 = arith.addf %46, %48 : vector<40x32xf32>
    %c0_36 = arith.constant 0 : index
    %c0_37 = arith.constant 0 : index
    %50 = vector.load %arg1[%c0_36, %c0_37] : memref<8x128xf32, #tpu.memory_space<vmem>>, vector<8x128xf32>
    %cst_38 = arith.constant dense<0.000000e+00> : vector<8x32xf32>
    %51 = tpu.matmul %50, %0, %cst_38 {dimension_numbers = #tpu.dot_dimension_numbers<[1], [0], [0], [1], [0, 0, 1, 1], [], []>} : vector<8x128xf32>, vector<128x32xf32>, vector<8x32xf32> -> vector<8x32xf32>
    %52 = vector.broadcast %1 : vector<1x32xf32> to vector<8x32xf32>
    %53 = arith.addf %51, %52 : vector<8x32xf32>
    %54 = vector.extract_strided_slice %49 {offsets = [0, 0], sizes = [8, 32], strides = [1, 1]} : vector<40x32xf32> to vector<8x32xf32>
    %55 = arith.addf %53, %54 : vector<8x32xf32>
    %56 = math.tanh %55 : vector<8x32xf32>
    %cst_39 = arith.constant dense<0.000000e+00> : vector<8x32xf32>
    %57 = tpu.matmul %56, %2, %cst_39 {dimension_numbers = #tpu.dot_dimension_numbers<[1], [0], [0], [1], [0, 0, 1, 1], [], []>} : vector<8x32xf32>, vector<32x32xf32>, vector<8x32xf32> -> vector<8x32xf32>
    %cst_40 = arith.constant dense<0.000000e+00> : vector<8x32xf32>
    %58 = tpu.matmul %43, %3, %cst_40 {dimension_numbers = #tpu.dot_dimension_numbers<[1], [0], [0], [1], [0, 0, 1, 1], [], []>} : vector<8x32xf32>, vector<32x32xf32>, vector<8x32xf32> -> vector<8x32xf32>
    %59 = arith.addf %57, %58 : vector<8x32xf32>
    %60 = vector.broadcast %6 : vector<1x32xf32> to vector<8x32xf32>
    %61 = arith.addf %59, %60 : vector<8x32xf32>
    %62 = math.tanh %61 : vector<8x32xf32>
    %cst_41 = arith.constant dense<0.000000e+00> : vector<8x128xf32>
    %63 = tpu.matmul %62, %7, %cst_41 {dimension_numbers = #tpu.dot_dimension_numbers<[1], [0], [0], [1], [0, 0, 1, 1], [], []>} : vector<8x32xf32>, vector<32x128xf32>, vector<8x128xf32> -> vector<8x128xf32>
    %64 = vector.broadcast %8 : vector<1x128xf32> to vector<8x128xf32>
    %65 = arith.addf %63, %64 : vector<8x128xf32>
    %66 = math.tanh %65 : vector<8x128xf32>
    %c0_42 = arith.constant 0 : index
    %c0_43 = arith.constant 0 : index
    %c0_44 = arith.constant 0 : index
    %67 = vector.load %arg15[%c0_42, %c0_43, %c0_44] : memref<5x8x128xf32, #tpu.memory_space<vmem>>, vector<1x8x128xf32>
    %68 = vector.shape_cast %67 : vector<1x8x128xf32> to vector<8x128xf32>
    %69 = vector.shape_cast %66 : vector<8x128xf32> to vector<1x8x128xf32>
    tpu.vector_store %arg15[%c0_42, %c0_43, %c0_44], %69 {strides = array<i32>} : memref<5x8x128xf32, #tpu.memory_space<vmem>>, vector<1x8x128xf32>,
    %cst_45 = arith.constant dense<0.000000e+00> : vector<8x32xf32>
    %70 = tpu.matmul %66, %0, %cst_45 {dimension_numbers = #tpu.dot_dimension_numbers<[1], [0], [0], [1], [0, 0, 1, 1], [], []>} : vector<8x128xf32>, vector<128x32xf32>, vector<8x32xf32> -> vector<8x32xf32>
    %71 = vector.broadcast %1 : vector<1x32xf32> to vector<8x32xf32>
    %72 = arith.addf %70, %71 : vector<8x32xf32>
    %73 = vector.extract_strided_slice %49 {offsets = [8, 0], sizes = [8, 32], strides = [1, 1]} : vector<40x32xf32> to vector<8x32xf32>
    %74 = arith.addf %72, %73 : vector<8x32xf32>
    %75 = math.tanh %74 : vector<8x32xf32>
    %cst_46 = arith.constant dense<0.000000e+00> : vector<8x32xf32>
    %76 = tpu.matmul %75, %2, %cst_46 {dimension_numbers = #tpu.dot_dimension_numbers<[1], [0], [0], [1], [0, 0, 1, 1], [], []>} : vector<8x32xf32>, vector<32x32xf32>, vector<8x32xf32> -> vector<8x32xf32>
    %cst_47 = arith.constant dense<0.000000e+00> : vector<8x32xf32>
    %77 = tpu.matmul %62, %3, %cst_47 {dimension_numbers = #tpu.dot_dimension_numbers<[1], [0], [0], [1], [0, 0, 1, 1], [], []>} : vector<8x32xf32>, vector<32x32xf32>, vector<8x32xf32> -> vector<8x32xf32>
    %78 = arith.addf %76, %77 : vector<8x32xf32>
    %79 = vector.broadcast %6 : vector<1x32xf32> to vector<8x32xf32>
    %80 = arith.addf %78, %79 : vector<8x32xf32>
    %81 = math.tanh %80 : vector<8x32xf32>
    %cst_48 = arith.constant dense<0.000000e+00> : vector<8x128xf32>
    %82 = tpu.matmul %81, %7, %cst_48 {dimension_numbers = #tpu.dot_dimension_numbers<[1], [0], [0], [1], [0, 0, 1, 1], [], []>} : vector<8x32xf32>, vector<32x128xf32>, vector<8x128xf32> -> vector<8x128xf32>
    %83 = vector.broadcast %8 : vector<1x128xf32> to vector<8x128xf32>
    %84 = arith.addf %82, %83 : vector<8x128xf32>
    %85 = math.tanh %84 : vector<8x128xf32>
    %c1 = arith.constant 1 : index
    %c0_49 = arith.constant 0 : index
    %c0_50 = arith.constant 0 : index
    %86 = vector.load %arg15[%c1, %c0_49, %c0_50] : memref<5x8x128xf32, #tpu.memory_space<vmem>>, vector<1x8x128xf32>
    %87 = vector.shape_cast %86 : vector<1x8x128xf32> to vector<8x128xf32>
    %88 = vector.shape_cast %85 : vector<8x128xf32> to vector<1x8x128xf32>
    tpu.vector_store %arg15[%c1, %c0_49, %c0_50], %88 {strides = array<i32>} : memref<5x8x128xf32, #tpu.memory_space<vmem>>, vector<1x8x128xf32>,
    %cst_51 = arith.constant dense<0.000000e+00> : vector<8x32xf32>
    %89 = tpu.matmul %85, %0, %cst_51 {dimension_numbers = #tpu.dot_dimension_numbers<[1], [0], [0], [1], [0, 0, 1, 1], [], []>} : vector<8x128xf32>, vector<128x32xf32>, vector<8x32xf32> -> vector<8x32xf32>
    %90 = vector.broadcast %1 : vector<1x32xf32> to vector<8x32xf32>
    %91 = arith.addf %89, %90 : vector<8x32xf32>
    %92 = vector.extract_strided_slice %49 {offsets = [16, 0], sizes = [8, 32], strides = [1, 1]} : vector<40x32xf32> to vector<8x32xf32>
    %93 = arith.addf %91, %92 : vector<8x32xf32>
    %94 = math.tanh %93 : vector<8x32xf32>
    %cst_52 = arith.constant dense<0.000000e+00> : vector<8x32xf32>
    %95 = tpu.matmul %94, %2, %cst_52 {dimension_numbers = #tpu.dot_dimension_numbers<[1], [0], [0], [1], [0, 0, 1, 1], [], []>} : vector<8x32xf32>, vector<32x32xf32>, vector<8x32xf32> -> vector<8x32xf32>
    %cst_53 = arith.constant dense<0.000000e+00> : vector<8x32xf32>
    %96 = tpu.matmul %81, %3, %cst_53 {dimension_numbers = #tpu.dot_dimension_numbers<[1], [0], [0], [1], [0, 0, 1, 1], [], []>} : vector<8x32xf32>, vector<32x32xf32>, vector<8x32xf32> -> vector<8x32xf32>
    %97 = arith.addf %95, %96 : vector<8x32xf32>
    %98 = vector.broadcast %6 : vector<1x32xf32> to vector<8x32xf32>
    %99 = arith.addf %97, %98 : vector<8x32xf32>
    %100 = math.tanh %99 : vector<8x32xf32>
    %cst_54 = arith.constant dense<0.000000e+00> : vector<8x128xf32>
    %101 = tpu.matmul %100, %7, %cst_54 {dimension_numbers = #tpu.dot_dimension_numbers<[1], [0], [0], [1], [0, 0, 1, 1], [], []>} : vector<8x32xf32>, vector<32x128xf32>, vector<8x128xf32> -> vector<8x128xf32>
    %102 = vector.broadcast %8 : vector<1x128xf32> to vector<8x128xf32>
    %103 = arith.addf %101, %102 : vector<8x128xf32>
    %104 = math.tanh %103 : vector<8x128xf32>
    %c2 = arith.constant 2 : index
    %c0_55 = arith.constant 0 : index
    %c0_56 = arith.constant 0 : index
    %105 = vector.load %arg15[%c2, %c0_55, %c0_56] : memref<5x8x128xf32, #tpu.memory_space<vmem>>, vector<1x8x128xf32>
    %106 = vector.shape_cast %105 : vector<1x8x128xf32> to vector<8x128xf32>
    %107 = vector.shape_cast %104 : vector<8x128xf32> to vector<1x8x128xf32>
    tpu.vector_store %arg15[%c2, %c0_55, %c0_56], %107 {strides = array<i32>} : memref<5x8x128xf32, #tpu.memory_space<vmem>>, vector<1x8x128xf32>,
    %cst_57 = arith.constant dense<0.000000e+00> : vector<8x32xf32>
    %108 = tpu.matmul %104, %0, %cst_57 {dimension_numbers = #tpu.dot_dimension_numbers<[1], [0], [0], [1], [0, 0, 1, 1], [], []>} : vector<8x128xf32>, vector<128x32xf32>, vector<8x32xf32> -> vector<8x32xf32>
    %109 = vector.broadcast %1 : vector<1x32xf32> to vector<8x32xf32>
    %110 = arith.addf %108, %109 : vector<8x32xf32>
    %111 = vector.extract_strided_slice %49 {offsets = [24, 0], sizes = [8, 32], strides = [1, 1]} : vector<40x32xf32> to vector<8x32xf32>
    %112 = arith.addf %110, %111 : vector<8x32xf32>
    %113 = math.tanh %112 : vector<8x32xf32>
    %cst_58 = arith.constant dense<0.000000e+00> : vector<8x32xf32>
    %114 = tpu.matmul %113, %2, %cst_58 {dimension_numbers = #tpu.dot_dimension_numbers<[1], [0], [0], [1], [0, 0, 1, 1], [], []>} : vector<8x32xf32>, vector<32x32xf32>, vector<8x32xf32> -> vector<8x32xf32>
    %cst_59 = arith.constant dense<0.000000e+00> : vector<8x32xf32>
    %115 = tpu.matmul %100, %3, %cst_59 {dimension_numbers = #tpu.dot_dimension_numbers<[1], [0], [0], [1], [0, 0, 1, 1], [], []>} : vector<8x32xf32>, vector<32x32xf32>, vector<8x32xf32> -> vector<8x32xf32>
    %116 = arith.addf %114, %115 : vector<8x32xf32>
    %117 = vector.broadcast %6 : vector<1x32xf32> to vector<8x32xf32>
    %118 = arith.addf %116, %117 : vector<8x32xf32>
    %119 = math.tanh %118 : vector<8x32xf32>
    %cst_60 = arith.constant dense<0.000000e+00> : vector<8x128xf32>
    %120 = tpu.matmul %119, %7, %cst_60 {dimension_numbers = #tpu.dot_dimension_numbers<[1], [0], [0], [1], [0, 0, 1, 1], [], []>} : vector<8x32xf32>, vector<32x128xf32>, vector<8x128xf32> -> vector<8x128xf32>
    %121 = vector.broadcast %8 : vector<1x128xf32> to vector<8x128xf32>
    %122 = arith.addf %120, %121 : vector<8x128xf32>
    %123 = math.tanh %122 : vector<8x128xf32>
    %c3 = arith.constant 3 : index
    %c0_61 = arith.constant 0 : index
    %c0_62 = arith.constant 0 : index
    %124 = vector.load %arg15[%c3, %c0_61, %c0_62] : memref<5x8x128xf32, #tpu.memory_space<vmem>>, vector<1x8x128xf32>
    %125 = vector.shape_cast %124 : vector<1x8x128xf32> to vector<8x128xf32>
    %126 = vector.shape_cast %123 : vector<8x128xf32> to vector<1x8x128xf32>
    tpu.vector_store %arg15[%c3, %c0_61, %c0_62], %126 {strides = array<i32>} : memref<5x8x128xf32, #tpu.memory_space<vmem>>, vector<1x8x128xf32>,
    %cst_63 = arith.constant dense<0.000000e+00> : vector<8x32xf32>
    %127 = tpu.matmul %123, %0, %cst_63 {dimension_numbers = #tpu.dot_dimension_numbers<[1], [0], [0], [1], [0, 0, 1, 1], [], []>} : vector<8x128xf32>, vector<128x32xf32>, vector<8x32xf32> -> vector<8x32xf32>
    %128 = vector.broadcast %1 : vector<1x32xf32> to vector<8x32xf32>
    %129 = arith.addf %127, %128 : vector<8x32xf32>
    %130 = vector.extract_strided_slice %49 {offsets = [32, 0], sizes = [8, 32], strides = [1, 1]} : vector<40x32xf32> to vector<8x32xf32>
    %131 = arith.addf %129, %130 : vector<8x32xf32>
    %132 = math.tanh %131 : vector<8x32xf32>
    %cst_64 = arith.constant dense<0.000000e+00> : vector<8x32xf32>
    %133 = tpu.matmul %132, %2, %cst_64 {dimension_numbers = #tpu.dot_dimension_numbers<[1], [0], [0], [1], [0, 0, 1, 1], [], []>} : vector<8x32xf32>, vector<32x32xf32>, vector<8x32xf32> -> vector<8x32xf32>
    %cst_65 = arith.constant dense<0.000000e+00> : vector<8x32xf32>
    %134 = tpu.matmul %119, %3, %cst_65 {dimension_numbers = #tpu.dot_dimension_numbers<[1], [0], [0], [1], [0, 0, 1, 1], [], []>} : vector<8x32xf32>, vector<32x32xf32>, vector<8x32xf32> -> vector<8x32xf32>
    %135 = arith.addf %133, %134 : vector<8x32xf32>
    %136 = vector.broadcast %6 : vector<1x32xf32> to vector<8x32xf32>
    %137 = arith.addf %135, %136 : vector<8x32xf32>
    %138 = math.tanh %137 : vector<8x32xf32>
    %cst_66 = arith.constant dense<0.000000e+00> : vector<8x128xf32>
    %139 = tpu.matmul %138, %7, %cst_66 {dimension_numbers = #tpu.dot_dimension_numbers<[1], [0], [0], [1], [0, 0, 1, 1], [], []>} : vector<8x32xf32>, vector<32x128xf32>, vector<8x128xf32> -> vector<8x128xf32>
    %140 = vector.broadcast %8 : vector<1x128xf32> to vector<8x128xf32>
    %141 = arith.addf %139, %140 : vector<8x128xf32>
    %142 = math.tanh %141 : vector<8x128xf32>
    %c4 = arith.constant 4 : index
    %c0_67 = arith.constant 0 : index
    %c0_68 = arith.constant 0 : index
    %143 = vector.load %arg15[%c4, %c0_67, %c0_68] : memref<5x8x128xf32, #tpu.memory_space<vmem>>, vector<1x8x128xf32>
    %144 = vector.shape_cast %143 : vector<1x8x128xf32> to vector<8x128xf32>
    %145 = vector.shape_cast %142 : vector<8x128xf32> to vector<1x8x128xf32>
    tpu.vector_store %arg15[%c4, %c0_67, %c0_68], %145 {strides = array<i32>} : memref<5x8x128xf32, #tpu.memory_space<vmem>>, vector<1x8x128xf32>,
    return
  }
}

</mosaic_0001>

<bundles_post_ra>
// kernel: rnn_model_forward.1
= control target key start
LH: loop header
LB: loop body
LE: loop exit
PB: predicated region body
PF: predicated region fallthrough
CT: control target
= control target key end

     0   :  { %20 = vsyncpa [#allocation3], 0  ;;  %s4141_s0 = inlined_call_operand.vmem [shape: f32[48,7], index: 0, kind: input, shape index: {}]   ;;  %s4142_s1 = inlined_call_operand.vmem [shape: f32[8,128], index: 1, kind: input, shape index: {}]   ;;  %s4143_s2 = inlined_call_operand.vmem [shape: f32[40,3], index: 2, kind: input, shape index: {}]   ;;  %s4144_s3 = inlined_call_operand.vmem [shape: f32[7,32], index: 3, kind: input, shape index: {}]   ;;  %s4145_s4 = inlined_call_operand.hbm [shape: f32[1,32], index: 4, kind: input, shape index: {}]   ;;  %s4146_s5 = inlined_call_operand.vmem [shape: f32[128,32], index: 5, kind: input, shape index: {}]   ;;  %s4147_s6 = inlined_call_operand.hbm [shape: f32[1,32], index: 6, kind: input, shape index: {}]   ;;  %s4148_s7 = inlined_call_operand.vmem [shape: f32[3,32], index: 7, kind: input, shape index: {}]   ;;  %s4149_s8 = inlined_call_operand.hbm [shape: f32[1,32], index: 8, kind: input, shape index: {}]   ;;  %s4150_s9 = inlined_call_operand.vmem [shape: f32[32,32], index: 9, kind: input, shape index: {}]   ;;  %s4151_s10 = inlined_call_operand.hbm [shape: f32[1,32], index: 10, kind: input, shape index: {}]   ;;  %s4152_s11 = inlined_call_operand.vmem [shape: f32[32,32], index: 11, kind: input, shape index: {}]   ;;  %s4153_s12 = inlined_call_operand.hbm [shape: f32[1,32], index: 12, kind: input, shape index: {}]   ;;  %s4154_s13 = inlined_call_operand.vmem [shape: f32[32,128], index: 13, kind: input, shape index: {}]   ;;  %s4155_s14 = inlined_call_operand.vmem [shape: f32[1,128], index: 14, kind: input, shape index: {}]   ;;  %s4156_s15 = inlined_call_operand.vmem [shape: f32[5,8,128], index: 15, kind: output, shape index: {}]  }
   0x1   :  { %21 = vsyncpa [#allocation5], 0 }
   0x2   :  { %22 = vsyncpa [#allocation8], 0  ;;  %s3345_s18 = smov [#allocation4]   ;;  %s3346_s20 = smov [#allocation7]  }
   0x3   :  { %s49_s19 = sshll.u32 %s3345_s18, 4  ;;  %s73_s21 = sshll.u32 %s3346_s20, 4  ;;  %s50_s19 = int_to_ptr.vmem [resolvable:$true] %s49_s19  ;;  %s74_s21 = int_to_ptr.vmem [resolvable:$true] %s73_s21 }
   0x4   :  { %s3247_s22 = scalar_lea.vmem %s50_s19, 16  ;;  %s3251_s23 = scalar_lea.vmem %s50_s19, 32 }
   0x5   :  { %p3248_p0 = scmp.ne.s32.totalorder %s50_s19, %s3247_s22  ;;  %p3252_p1 = scmp.lt.s32.totalorder %s50_s19, %s50_s19 }
   0x6   :  { %p3253_p2 = scmp.lt.s32.totalorder %s3251_s23, %s3247_s22 }
   0x8   :  { %p3254_p3 = por %p3253_p2, %p3252_p1 }
   0xa   :  { %p3255_p4 = pnand %p3254_p3, %p3248_p0 }
   0xc   :  { %3258 = shalt.err (!%p3255_p4)
}
   0xd   :  { %52 = dma.hbm_to_vmem [thread:$0]  %s4147_s6, 16, %s50_s19, [#allocation5]  }
   0xe   :  { %s3267_s26 = scalar_lea.vmem %s74_s21, 16  ;;  %s3271_s27 = scalar_lea.vmem %s74_s21, 32 }
   0xf   :  { %p3268_p5 = scmp.ne.s32.totalorder %s74_s21, %s3267_s26  ;;  %p3272_p6 = scmp.lt.s32.totalorder %s74_s21, %s74_s21 }
  0x10   :  { %p3273_p7 = scmp.lt.s32.totalorder %s3271_s27, %s3267_s26 }
  0x12   :  { %p3274_p8 = por %p3273_p7, %p3272_p6 }
  0x14   :  { %p3275_p9 = pnand %p3274_p8, %p3268_p5 }
  0x16   :  { %3278 = shalt.err (!%p3275_p9)
}
  0x17   :  { %76 = dma.hbm_to_vmem [thread:$0]  %s4151_s10, 16, %s74_s21, [#allocation8]  }
  0x18   :  { %s3347_s30 = smov [#allocation2]   ;;  %s3348_s17 = smov [#allocation6]  }
  0x19   :  { %s37_s16 = sshll.u32 %s3347_s30, 4  ;;  %s61_s18 = sshll.u32 %s3348_s17, 4  ;;  %s38_s16 = int_to_ptr.vmem [resolvable:$true] %s37_s16  ;;  %s62_s18 = int_to_ptr.vmem [resolvable:$true] %s61_s18 }
  0x1a   :  { %s3287_s20 = scalar_lea.vmem %s38_s16, 16  ;;  %s3291_s6 = scalar_lea.vmem %s38_s16, 32 }
  0x1b   :  { %p3288_p10 = scmp.ne.s32.totalorder %s38_s16, %s3287_s20  ;;  %p3292_p11 = scmp.lt.s32.totalorder %s38_s16, %s38_s16 }
  0x1c   :  { %p3293_p12 = scmp.lt.s32.totalorder %s3291_s6, %s3287_s20 }
  0x1e   :  { %p3294_p13 = por %p3293_p12, %p3292_p11 }
  0x20   :  { %p3295_p0 = pnand %p3294_p13, %p3288_p10 }
  0x22   :  { %3298 = shalt.err (!%p3295_p0)
}
  0x23   :  { %40 = dma.hbm_to_vmem [thread:$0]  %s4145_s4, 16, %s38_s16, [#allocation3]  }
  0x24   :  { %s3307_s23 = scalar_lea.vmem %s62_s18, 16  ;;  %s3311_s10 = scalar_lea.vmem %s62_s18, 32 }
  0x25   :  { %p3308_p1 = scmp.ne.s32.totalorder %s62_s18, %s3307_s23  ;;  %p3312_p2 = scmp.lt.s32.totalorder %s62_s18, %s62_s18 }
  0x26   :  { %p3313_p3 = scmp.lt.s32.totalorder %s3311_s10, %s3307_s23 }
  0x28   :  { %p3314_p4 = por %p3313_p3, %p3312_p2 }
  0x2a   :  { %p3315_p5 = pnand %p3314_p4, %p3308_p1 }
  0x2c   :  { %3318 = shalt.err (!%p3315_p5)
}
  0x2d   :  { %64 = dma.hbm_to_vmem [thread:$0]  %s4149_s8, 16, %s62_s18, [#allocation5]  }
  0x2e   :  { %s3349_s25 = smov [#allocation9]  }
  0x2f   :  { %s85_s26 = sshll.u32 %s3349_s25, 4  ;;  %s86_s26 = int_to_ptr.vmem [resolvable:$true] %s85_s26 }
  0x30   :  { %s3327_s27 = scalar_lea.vmem %s86_s26, 16  ;;  %s3331_s28 = scalar_lea.vmem %s86_s26, 32 }
  0x31   :  { %p3328_p6 = scmp.ne.s32.totalorder %s86_s26, %s3327_s27  ;;  %p3332_p7 = scmp.lt.s32.totalorder %s86_s26, %s86_s26 }
  0x32   :  { %p3333_p8 = scmp.lt.s32.totalorder %s3331_s28, %s3327_s27 }
  0x34   :  { %p3334_p9 = por %p3333_p8, %p3332_p7 }
  0x36   :  { %p3335_p10 = pnand %p3334_p9, %p3328_p6 }
  0x38   :  { %3338 = shalt.err (!%p3335_p10)
}
  0x39   :  { %88 = dma.hbm_to_vmem [thread:$0]  %s4153_s12, 16, %s86_s26, [#allocation8]  }
  0x3a   :  { %3339 = dma.done.wait [#allocation3], 16  }
  0x3b   :  { %3340 = vsyncadd [#allocation3], 4294967280 }
  0x3c   :  { %3341 = dma.done.wait [#allocation5], 32  }
  0x3d   :  { %3342 = vsyncadd [#allocation5], 4294967264 }
  0x3e   :  { %3343 = dma.done.wait [#allocation8], 32  }
  0x3f   :  { %3344 = vsyncadd [#allocation8], 4294967264  ;;  %vm174_vm0 = vcmask 1046528   ;;  %vm155_vm1 = vcmask 56320   ;;  %v147_v0 = vld [vmem:[%s4144_s3] sm:$0x7f]  ;;  %v280_v37 = vlaneseq }
  0x40   :  { %v141_v1 = vld [vmem:[%s4141_s0] sm:$0xff]  ;;  %v142_v2 = vld [vmem:[%s4141_s0 + $0x8] sm:$0xff]  ;;  %2719 = vmatprep.subr.msk.mxu0 %vm174_vm0, %v147_v0  ;;  %3170 = vmatprep.subr.msk.mxu1 %vm174_vm0, %v147_v0  ;;  %v143_v3 = vld [vmem:[%s4141_s0 + $0x10] sm:$0xff]  ;;  %v3350_v10 = vmov 0.0   ;;  %vm3351_vm2 = vmmov 0   ;;  %vm285_vm3 = vcmask 261120  }
  0x41   :  { %2721 = vmatprep.mubr.msk.f32.mxu0 %vm155_vm1, %v141_v1  ;;  %2720 = vmatpush3.msk.msra.mxu0 %vm174_vm0, %v147_v0  ;;  %v144_v4 = vld [vmem:[%s4141_s0 + $0x18] sm:$0xff]  ;;  %v145_v5 = vld [vmem:[%s4141_s0 + $0x20] sm:$0xff]  ;;  %v146_v6 = vld [vmem:[%s4141_s0 + $0x28] sm:$0xff]  ;;  %v281_v38 = vshrl.u32 %v280_v37, 7  ;;  %vm878_vm4 = vcmask 1042432   ;;  %vm862_vm5 = vcmask 23552  }
  0x42   :  { %2722 = vmatmul.mubr.msk.f32.vlgmr.msra.gmra.mxu0 %vm155_vm1, %v142_v2  ;;  %3171 = vmatpush3.msk.msra.mxu1 %vm174_vm0, %v147_v0  ;;  %v3475_v7 = vld [vmem:[%s4150_s9 + $0x18] sm:$0xff]  ;;  %v3482_v8 = vld [vmem:[%s4150_s9 + $0x10] sm:$0xff]  ;;  %v3501_v12 = vld [vmem:[%s4150_s9 + $0x8] sm:$0xff] }
  0x43   :  { %2724 = vmatprep.mubr.msk.f32.mxu0 %vm155_vm1, %v143_v3  ;;  %2727 = vmatprep.mubr.msk.f32.mxu1 %vm155_vm1, %v145_v5  ;;  %v3487_v9 = vld [vmem:[%s4152_s11 + $0x18] sm:$0xff]  ;;  %v3494_v11 = vld [vmem:[%s4152_s11 + $0x10] sm:$0xff]  ;;  %v3510_v13 = vld [vmem:[%s4150_s9] sm:$0xff]  ;;  %v282_v42 = vsub.s32 0, %v281_v38 }
  0x44   :  { %2730 = vmatprep.subr.mxu1 %v3475_v7  ;;  %2728 = vmatmul.mubr.msk.f32.vlgmr.msra.gmra.mxu1 %vm155_vm1, %v146_v6  ;;  %v3521_v14 = vld [vmem:[%s4152_s11 + $0x8] sm:$0xff]  ;;  %v3528_v15 = vld [vmem:[%s4152_s11] sm:$0xff]  ;;  %v3617_v6 = vld [vmem:[%s4146_s5 + $0x78] sm:$0xff] }
  0x45   :  { %2747 = vmatprep.subr.mxu0 %v3350_v10  ;;  %2731 = vmatpush3.msra.mxu1 %v3475_v7  ;;  %v2459_v16 = vld [vmem:[#allocation2] ss:$0 sm:$0xff]  ;;  %v133_v39 = vld [vmem:[#allocation7] sm:$0x1]  ;;  %v134_v40 = vld [vmem:[#allocation9] sm:$0x1] }
  0x46   :  { %2725 = vmatmul.mubr.msk.f32.gmra.mxu0 %vm155_vm1, %v144_v4  ;;  %2732 = vmatprep.subr.mxu1 %v3482_v8  ;;  %v135_v41 = vadd.f32 %v134_v40, %v133_v39  ;;  %v854_v3 = vld [vmem:[%s4148_s7] sm:$0x7] }
  0x47   :  { %2748 = vmatpush3.msra.mxu0 %v3487_v9  ;;  %2733 = vmatpush3.msra.mxu1 %v3482_v8  ;;  %v849_v5 = vld [vmem:[%s4143_s2] sm:$0xff] }
  0x48   :  { %2749 = vmatprep.subr.mxu0 %v3350_v10  ;;  %2734 = vmatprep.subr.mxu1 %v3501_v12  ;;  %v3561_v44 = vrot.slane %v135_v41, %v282_v42  ;;  %v2478_v42 = vld [vmem:[#allocation6] ss:$0 sm:$0xff] }
  0x49   :  { %2750 = vmatpush3.msra.mxu0 %v3494_v11  ;;  %2735 = vmatpush3.msra.mxu1 %v3501_v12 }
  0x4a   :  { %2751 = vmatprep.subr.mxu0 %v3350_v10  ;;  %2736 = vmatprep.subr.mxu1 %v3510_v13 }
  0x4b   :  { %2737 = vmatpush3.msra.mxu1 %v3510_v13  ;;  %2752 = vmatpush3.msra.mxu0 %v3521_v14 }
  0x4c   :  { %2758 = vmatprep.subr.mxu1 %v3350_v10  ;;  %2753 = vmatprep.subr.mxu0 %v3350_v10 }
  0x4d   :  { %2754 = vmatpush3.msra.mxu0 %v3528_v15  ;;  %2755 = vmatprep.mubr.msk.f32.mxu0 %vm3351_vm2, %v3350_v10 }
  0x4e   :  { %2756 = vmatmul.mubr.f32.vlgmr.msra.gmra.mxu0 %v3350_v10  ;;  %2769 = vmatprep.subr.mxu0 %v3350_v10 }
  0x4f   :  { %2770 = vmatpush3.msra.mxu0 %v3487_v9  ;;  %2777 = vmatprep.mubr.msk.f32.mxu0 %vm3351_vm2, %v3350_v10 }
  0x50   :  { %2771 = vmatprep.subr.mxu0 %v3350_v10 }
  0x51   :  { %2772 = vmatpush3.msra.mxu0 %v3494_v11 }
  0x52   :  { %2773 = vmatprep.subr.mxu0 %v3350_v10 }
  0x53   :  { %2774 = vmatpush3.msra.mxu0 %v3521_v14 }
  0x54   :  { %2775 = vmatprep.subr.mxu0 %v3350_v10 }
  0x55   :  { %2776 = vmatpush3.msra.mxu0 %v3528_v15 }
  0x56   :  { %2791 = vmatprep.subr.mxu0 %v3350_v10 }
 0x102   :  { %v2723_v17 = vpop.f32.mrf.mxu0 }
 0x103   :  { %v250_v18 = vadd.f32 %v2723_v17, %v2459_v16  ;;  %v850_v17 = vld [vmem:[%s4143_s2 + $0x8] sm:$0xff] }
 0x104   :  { %v244_v19 = vpop.f32.mrf.mxu0  ;;  %v2729_v27 = vpop.f32.mrf.mxu1 }
 0x105   :  { %v245_v20 = vadd.f32 %v2459_v16, %v244_v19  ;;  %v270_v28 = vadd.f32 %v2729_v27, %v2459_v16  ;;  %v3642_v19 = vld [vmem:[%s4146_s5 + $0x60] sm:$0xff]  ;;  %v3695_v27 = vld [vmem:[%s4146_s5 + $0x38] sm:$0xff] }
 0x106   :  { %v2726_v23 = vpop.f32.mrf.mxu0  ;;  %v264_v29 = vpop.f32.mrf.mxu1 }
 0x107   :  { %3179 = vtanh.f32 %v245_v20  ;;  %v260_v24 = vadd.f32 %v2726_v23, %v2459_v16  ;;  %v265_v30 = vadd.f32 %v2459_v16, %v264_v29  ;;  %v851_v20 = vld [vmem:[%s4143_s2 + $0x10] sm:$0xff]  ;;  %v852_v23 = vld [vmem:[%s4143_s2 + $0x18] sm:$0xff]  ;;  %v3712_v29 = vld [vmem:[%s4146_s5 + $0x28] sm:$0xff] }
 0x108   :  { %3181 = vtanh.f32 %v250_v18  ;;  %v254_v25 = vpop.f32.mrf.mxu0  ;;  %v3635_v18 = vld [vmem:[%s4146_s5 + $0x68] sm:$0xff] }
 0x109   :  { %v255_v26 = vadd.f32 %v2459_v16, %v254_v25  ;;  %3183 = vtanh.f32 %v260_v24  ;;  %v3623_v16 = vld [vmem:[%s4146_s5 + $0x70] sm:$0xff]  ;;  %v3675_v24 = vld [vmem:[%s4146_s5 + $0x48] sm:$0xff]  ;;  %v3682_v25 = vld [vmem:[%s4146_s5 + $0x40] sm:$0xff] }
 0x10b   :  { %3185 = vtanh.f32 %v255_v26  ;;  %v853_v26 = vld [vmem:[%s4143_s2 + $0x20] sm:$0xff] }
 0x10c   :  { %3187 = vtanh.f32 %v270_v28  ;;  %v3702_v28 = vld [vmem:[%s4146_s5 + $0x30] sm:$0xff] }
 0x10d   :  { %3189 = vtanh.f32 %v265_v30  ;;  %v3719_v30 = vld [vmem:[%s4146_s5 + $0x20] sm:$0xff] }
 0x10e   :  { %v468_v33 = vpop.f32.mrf.mxu0 }
 0x110   :  { %v2757_v35 = vpop.f32.mrf.mxu0 }
 0x111   :  { %v972_v35 = vld [vmem:[%s4142_s1] sm:$0xff] }
 0x114   :  { %v3180_v21 = vpop.eup %3179 }
 0x115   :  { %v3182_v22 = vpop.eup %3181  ;;  %2738 = vmatprep.mubr.msk.f32.mxu1 %vm285_vm3, %v3180_v21  ;;  %v3655_v21 = vld [vmem:[%s4146_s5 + $0x58] sm:$0xff] }
 0x116   :  { %2739 = vmatmul.mubr.msk.f32.vlgmr.msra.gmra.mxu1 %vm285_vm3, %v3182_v22  ;;  %v3184_v31 = vpop.eup %3183  ;;  %v3662_v22 = vld [vmem:[%s4146_s5 + $0x50] sm:$0xff] }
 0x117   :  { %2759 = vmatpush3.msra.mxu1 %v3487_v9 }
 0x118   :  { %2760 = vmatprep.subr.mxu1 %v3350_v10  ;;  %v3186_v32 = vpop.eup %3185 }
 0x119   :  { %2761 = vmatpush3.msra.mxu1 %v3494_v11  ;;  %2741 = vmatprep.mubr.msk.f32.mxu1 %vm285_vm3, %v3186_v32  ;;  %v3188_v34 = vpop.eup %3187  ;;  %v3733_v32 = vld [vmem:[%s4146_s5 + $0x10] sm:$0xff] }
 0x11a   :  { %2762 = vmatprep.subr.mxu1 %v3350_v10  ;;  %2742 = vmatmul.mubr.msk.f32.gmra.mxu1 %vm285_vm3, %v3184_v31  ;;  %v3190_v36 = vpop.eup %3189  ;;  %v3726_v31 = vld [vmem:[%s4146_s5 + $0x18] sm:$0xff] }
 0x11b   :  { %2763 = vmatpush3.msra.mxu1 %v3521_v14  ;;  %2744 = vmatprep.mubr.msk.f32.mxu1 %vm285_vm3, %v3190_v36 }
 0x11c   :  { %2764 = vmatprep.subr.mxu1 %v3350_v10 }
 0x11d   :  { %2765 = vmatpush3.msra.mxu1 %v3528_v15 }
 0x11e   :  { %2780 = vmatprep.subr.mxu1 %v3350_v10  ;;  %2745 = vmatmul.mubr.msk.f32.gmra.mxu1 %vm285_vm3, %v3188_v34  ;;  %v3747_v34 = vld [vmem:[%s4146_s5] sm:$0xff] }
 0x11f   :  { %2766 = vmatprep.mubr.msk.f32.mxu1 %vm3351_vm2, %v3350_v10 }
 0x1d6   :  { %v2740_v43 = vpop.f32.mrf.mxu1 }
 0x1d7   :  { %v376_v53 = vadd.f32 %v2740_v43, %v3561_v44 }
 0x1d8   :  { %v370_v45 = vpop.f32.mrf.mxu1 }
 0x1d9   :  { %v371_v46 = vadd.f32 %v370_v45, %v3561_v44 }
 0x1da   :  { %v2743_v49 = vpop.f32.mrf.mxu1 }
 0x1db   :  { %v472_v47 = vadd.f32 %v468_v33, %v371_v46  ;;  %v386_v63 = vadd.f32 %v2743_v49, %v3561_v44  ;;  %v3740_v33 = vld [vmem:[%s4146_s5 + $0x8] sm:$0xff] }
 0x1dc   :  { %v380_v50 = vpop.f32.mrf.mxu1 }
 0x1dd   :  { %3191 = vtanh.f32 %v472_v47  ;;  %v381_v58 = vadd.f32 %v380_v50, %v3561_v44 }
 0x1de   :  { %v3575_v51 = vpop.f32.mrf.mxu1 }
 0x1e0   :  { %v3577_v52 = vpop.f32.mrf.mxu1 }
 0x1e1   :  { %v391_v36 = vadd.f32 %v3577_v52, %v3561_v44 }
 0x1ea   :  { %v3192_v48 = vpop.eup %3191 }
 0x1eb   :  { %2767 = vmatmul.mubr.msk.f32.vlgmr.msra.gmra.mxu1 %vm285_vm3, %v3192_v48 }
 0x1ec   :  { %2781 = vmatpush3.msra.mxu1 %v3487_v9  ;;  %2788 = vmatprep.mubr.msk.f32.mxu1 %vm3351_vm2, %v3350_v10 }
 0x1ed   :  { %2782 = vmatprep.subr.mxu1 %v3350_v10 }
 0x1ee   :  { %2783 = vmatpush3.msra.mxu1 %v3494_v11 }
 0x1ef   :  { %2784 = vmatprep.subr.mxu1 %v3350_v10 }
 0x1f0   :  { %2785 = vmatpush3.msra.mxu1 %v3521_v14 }
 0x1f1   :  { %2786 = vmatprep.subr.mxu1 %v3350_v10 }
 0x1f2   :  { %2787 = vmatpush3.msra.mxu1 %v3528_v15 }
 0x1f3   :  { %2802 = vmatprep.subr.mxu1 %v3350_v10 }
 0x2ab   :  { %v543_v54 = vpop.f32.mrf.mxu1 }
 0x2ac   :  { %v547_v55 = vadd.f32 %v543_v54, %v376_v53 }
 0x2ad   :  { %v2768_v56 = vpop.f32.mrf.mxu1 }
 0x2ae   :  { %3193 = vtanh.f32 %v547_v55 }
 0x2bb   :  { %v3194_v57 = vpop.eup %3193 }
 0x2bc   :  { %2778 = vmatmul.mubr.msk.f32.vlgmr.msra.gmra.mxu0 %vm285_vm3, %v3194_v57 }
 0x2bd   :  { %2792 = vmatpush3.msra.mxu0 %v3487_v9  ;;  %2799 = vmatprep.mubr.msk.f32.mxu0 %vm3351_vm2, %v3350_v10 }
 0x2be   :  { %2793 = vmatprep.subr.mxu0 %v3350_v10 }
 0x2bf   :  { %2794 = vmatpush3.msra.mxu0 %v3494_v11 }
 0x2c0   :  { %2795 = vmatprep.subr.mxu0 %v3350_v10 }
 0x2c1   :  { %2796 = vmatpush3.msra.mxu0 %v3521_v14 }
 0x2c2   :  { %2797 = vmatprep.subr.mxu0 %v3350_v10 }
 0x2c3   :  { %2798 = vmatpush3.msra.mxu0 %v3528_v15 }
 0x2c4   :  { %2813 = vmatprep.subr.mxu0 %v3350_v10 }
 0x37c   :  { %v618_v59 = vpop.f32.mrf.mxu0 }
 0x37d   :  { %v622_v60 = vadd.f32 %v618_v59, %v381_v58  ;;  %v3787_v58 = vld [vmem:[#allocation4] ss:$0 sm:$0xff] }
 0x37e   :  { %v2779_v61 = vpop.f32.mrf.mxu0 }
 0x37f   :  { %3195 = vtanh.f32 %v622_v60 }
 0x38c   :  { %v3196_v62 = vpop.eup %3195 }
 0x38d   :  { %2789 = vmatmul.mubr.msk.f32.vlgmr.msra.gmra.mxu1 %vm285_vm3, %v3196_v62 }
 0x38e   :  { %2803 = vmatpush3.msra.mxu1 %v3487_v9  ;;  %2810 = vmatprep.mubr.msk.f32.mxu1 %vm3351_vm2, %v3350_v10 }
 0x38f   :  { %2804 = vmatprep.subr.mxu1 %v3350_v10 }
 0x390   :  { %2805 = vmatpush3.msra.mxu1 %v3494_v11 }
 0x391   :  { %2806 = vmatprep.subr.mxu1 %v3350_v10 }
 0x392   :  { %2807 = vmatpush3.msra.mxu1 %v3521_v14 }
 0x393   :  { %2808 = vmatprep.subr.mxu1 %v3350_v10 }
 0x394   :  { %2809 = vmatpush3.msra.mxu1 %v3528_v15 }
 0x395   :  { %2865 = vmatprep.subr.mxu1 %v3350_v10 }
 0x44d   :  { %v693_v0 = vpop.f32.mrf.mxu1 }
 0x44e   :  { %v697_v1 = vadd.f32 %v693_v0, %v386_v63  ;;  %v396_v0 = vadd.f32 %v3575_v51, %v3561_v44 }
 0x44f   :  { %v2790_v2 = vpop.f32.mrf.mxu1 }
 0x450   :  { %3197 = vtanh.f32 %v697_v1 }
 0x45d   :  { %v3198_v4 = vpop.eup %3197 }
 0x45e   :  { %2800 = vmatmul.mubr.msk.f32.vlgmr.msra.gmra.mxu0 %vm285_vm3, %v3198_v4 }
 0x45f   :  { %2814 = vmatpush3.msk.msra.mxu0 %vm878_vm4, %v854_v3  ;;  %2815 = vmatprep.mubr.msk.f32.mxu0 %vm3351_vm2, %v3350_v10 }
 0x460   :  { %2830 = vmatprep.subr.mxu0 %v3350_v10 }
 0x462   :  { %2816 = vmatmul.mubr.msk.f32.vlgmr.msra.gmra.mxu0 %vm862_vm5, %v849_v5  ;;  %v3809_v5 = vld [vmem:[%s4154_s13 + $0x18] sm:$0xff] }
 0x463   :  { %2831 = vmatpush3.msra.mxu0 %v3617_v6  ;;  %2818 = vmatprep.mubr.msk.f32.mxu0 %vm3351_vm2, %v3350_v10 }
 0x464   :  { %2832 = vmatprep.subr.mxu0 %v3350_v10 }
 0x465   :  { %2833 = vmatpush3.msra.mxu0 %v3623_v16 }
 0x466   :  { %2834 = vmatprep.subr.mxu0 %v3350_v10  ;;  %2819 = vmatmul.mubr.msk.f32.gmra.mxu0 %vm862_vm5, %v850_v17  ;;  %v3814_v17 = vld [vmem:[%s4154_s13 + $0x10] sm:$0xff] }
 0x467   :  { %2835 = vmatpush3.msra.mxu0 %v3635_v18  ;;  %2821 = vmatprep.mubr.msk.f32.mxu0 %vm3351_vm2, %v3350_v10 }
 0x468   :  { %2836 = vmatprep.subr.mxu0 %v3350_v10 }
 0x469   :  { %2837 = vmatpush3.msra.mxu0 %v3642_v19 }
 0x46a   :  { %2838 = vmatprep.subr.mxu0 %v3350_v10  ;;  %2822 = vmatmul.mubr.msk.f32.gmra.mxu0 %vm862_vm5, %v851_v20  ;;  %v3821_v20 = vld [vmem:[%s4154_s13 + $0x8] sm:$0xff] }
 0x46b   :  { %2839 = vmatpush3.msra.mxu0 %v3655_v21  ;;  %2824 = vmatprep.mubr.msk.f32.mxu0 %vm3351_vm2, %v3350_v10 }
 0x46c   :  { %2840 = vmatprep.subr.mxu0 %v3350_v10 }
 0x46d   :  { %2841 = vmatpush3.msra.mxu0 %v3662_v22 }
 0x46e   :  { %2842 = vmatprep.subr.mxu0 %v3350_v10  ;;  %2825 = vmatmul.mubr.msk.f32.gmra.mxu0 %vm862_vm5, %v852_v23  ;;  %v3828_v23 = vld [vmem:[%s4154_s13] sm:$0xff] }
 0x46f   :  { %2843 = vmatpush3.msra.mxu0 %v3675_v24  ;;  %2827 = vmatprep.mubr.msk.f32.mxu0 %vm3351_vm2, %v3350_v10 }
 0x470   :  { %2844 = vmatprep.subr.mxu0 %v3350_v10 }
 0x471   :  { %2845 = vmatpush3.msra.mxu0 %v3682_v25 }
 0x472   :  { %2846 = vmatprep.subr.mxu0 %v3350_v10  ;;  %2828 = vmatmul.mubr.msk.f32.gmra.mxu0 %vm862_vm5, %v853_v26 }
 0x473   :  { %2847 = vmatpush3.msra.mxu0 %v3695_v27  ;;  %2862 = vmatprep.mubr.msk.f32.mxu0 %vm3351_vm2, %v3350_v10 }
 0x474   :  { %2848 = vmatprep.subr.mxu0 %v3350_v10 }
 0x475   :  { %2849 = vmatpush3.msra.mxu0 %v3702_v28 }
 0x476   :  { %2850 = vmatprep.subr.mxu0 %v3350_v10 }
 0x477   :  { %2851 = vmatpush3.msra.mxu0 %v3712_v29 }
 0x478   :  { %2852 = vmatprep.subr.mxu0 %v3350_v10 }
 0x479   :  { %2853 = vmatpush3.msra.mxu0 %v3719_v30 }
 0x47a   :  { %2854 = vmatprep.subr.mxu0 %v3350_v10 }
 0x47b   :  { %2855 = vmatpush3.msra.mxu0 %v3726_v31 }
 0x47c   :  { %2856 = vmatprep.subr.mxu0 %v3350_v10 }
 0x47d   :  { %2857 = vmatpush3.msra.mxu0 %v3733_v32 }
 0x47e   :  { %2858 = vmatprep.subr.mxu0 %v3350_v10 }
 0x47f   :  { %2859 = vmatpush3.msra.mxu0 %v3740_v33 }
 0x480   :  { %2860 = vmatprep.subr.mxu0 %v3350_v10 }
 0x481   :  { %2861 = vmatpush3.msra.mxu0 %v3747_v34 }
 0x482   :  { %2863 = vmatmul.mubr.f32.vlgmr.msra.gmra.mxu0 %v972_v35  ;;  %2933 = vmatprep.subr.mxu0 %v3350_v10 }
 0x483   :  { %2934 = vmatpush3.msra.mxu0 %v3487_v9  ;;  %2941 = vmatprep.mubr.msk.f32.mxu0 %vm3351_vm2, %v3350_v10 }
 0x484   :  { %2935 = vmatprep.subr.mxu0 %v3350_v10 }
 0x485   :  { %2936 = vmatpush3.msra.mxu0 %v3494_v11 }
 0x486   :  { %2937 = vmatprep.subr.mxu0 %v3350_v10 }
 0x487   :  { %2938 = vmatpush3.msra.mxu0 %v3521_v14 }
 0x488   :  { %2939 = vmatprep.subr.mxu0 %v3350_v10 }
 0x489   :  { %2940 = vmatpush3.msra.mxu0 %v3528_v15 }
 0x48a   :  { %2944 = vmatprep.subr.mxu0 %v3350_v10 }
 0x51e   :  { %v768_v37 = vpop.f32.mrf.mxu0 }
 0x51f   :  { %v772_v38 = vadd.f32 %v768_v37, %v391_v36 }
 0x520   :  { %v2801_v39 = vpop.f32.mrf.mxu0 }
 0x521   :  { %3199 = vtanh.f32 %v772_v38 }
 0x522   :  { %v948_v40 = vpop.f32.mrf.mxu0 }
 0x523   :  { %v949_v59 = vadd.f32 %v2478_v42, %v948_v40 }
 0x524   :  { %v2817_v41 = vpop.f32.mrf.mxu0 }
 0x525   :  { %v3884_v41 = vld [vmem:[%s4155_s14] ss:$0 sm:$0xff] }
 0x526   :  { %v953_v43 = vpop.f32.mrf.mxu0 }
 0x527   :  { %v3768_v45 = vadd.f32 %v2478_v42, %v953_v43 }
 0x528   :  { %v2820_v46 = vpop.f32.mrf.mxu0 }
 0x52a   :  { %v958_v47 = vpop.f32.mrf.mxu0 }
 0x52b   :  { %v3770_v48 = vadd.f32 %v2478_v42, %v958_v47 }
 0x52c   :  { %v2823_v49 = vpop.f32.mrf.mxu0 }
 0x52e   :  { %v3200_v50 = vpop.eup %3199  ;;  %v963_v53 = vpop.f32.mrf.mxu0 }
 0x52f   :  { %2811 = vmatmul.mubr.msk.f32.vlgmr.msra.gmra.mxu1 %vm285_vm3, %v3200_v50  ;;  %v3773_v52 = vadd.f32 %v2478_v42, %v963_v53 }
 0x530   :  { %v2826_v54 = vpop.f32.mrf.mxu0  ;;  %2866 = vmatpush3.msra.mxu1 %v3487_v9  ;;  %2873 = vmatprep.mubr.msk.f32.mxu1 %vm3351_vm2, %v3350_v10 }
 0x531   :  { %2867 = vmatprep.subr.mxu1 %v3350_v10 }
 0x532   :  { %v968_v55 = vpop.f32.mrf.mxu0  ;;  %2868 = vmatpush3.msra.mxu1 %v3494_v11 }
 0x533   :  { %v3780_v56 = vadd.f32 %v2478_v42, %v968_v55  ;;  %2869 = vmatprep.subr.mxu1 %v3350_v10 }
 0x534   :  { %v2829_v57 = vpop.f32.mrf.mxu0  ;;  %2870 = vmatpush3.msra.mxu1 %v3521_v14 }
 0x535   :  { %2871 = vmatprep.subr.mxu1 %v3350_v10 }
 0x536   :  { %2872 = vmatpush3.msra.mxu1 %v3528_v15 }
 0x537   :  { %2876 = vmatprep.subr.mxu1 %v3350_v10 }
 0x542   :  { %v1045_v60 = vpop.f32.mrf.mxu0 }
 0x543   :  { %v1046_v61 = vadd.f32 %v3787_v58, %v1045_v60 }
 0x544   :  { %v2864_v62 = vpop.f32.mrf.mxu0 }
 0x545   :  { %v1049_v63 = vadd.f32 %v1046_v61, %v949_v59 }
 0x5ef   :  { %v843_v1 = vpop.f32.mrf.mxu1 }
 0x5f0   :  { %v847_v2 = vadd.f32 %v843_v1, %v396_v0 }
 0x5f1   :  { %v2812_v3 = vpop.f32.mrf.mxu1 }
 0x5f2   :  { %3201 = vtanh.f32 %v847_v2 }
 0x5f3   :  { %3203 = vtanh.f32 %v1049_v63 }
 0x5ff   :  { %v3202_v4 = vpop.eup %3201 }
 0x600   :  { %2874 = vmatmul.mubr.msk.f32.vlgmr.msra.gmra.mxu1 %vm285_vm3, %v3202_v4  ;;  %v3204_v51 = vpop.eup %3203 }
 0x601   :  { %2877 = vmatpush3.msra.mxu1 %v3475_v7  ;;  %2884 = vmatprep.mubr.msk.f32.mxu1 %vm3351_vm2, %v3350_v10 }
 0x602   :  { %2878 = vmatprep.subr.mxu1 %v3350_v10 }
 0x603   :  { %2879 = vmatpush3.msra.mxu1 %v3482_v8 }
 0x604   :  { %2880 = vmatprep.subr.mxu1 %v3350_v10 }
 0x605   :  { %2881 = vmatpush3.msra.mxu1 %v3501_v12 }
 0x606   :  { %2882 = vmatprep.subr.mxu1 %v3350_v10 }
 0x607   :  { %2883 = vmatpush3.msra.mxu1 %v3510_v13 }
 0x608   :  { %2885 = vmatmul.mubr.msk.f32.vlgmr.msra.gmra.mxu1 %vm285_vm3, %v3204_v51  ;;  %2887 = vmatprep.subr.mxu1 %v3350_v10 }
 0x609   :  { %2895 = vmatprep.mubr.msk.f32.mxu1 %vm3351_vm2, %v3350_v10  ;;  %2888 = vmatpush3.msra.mxu1 %v3809_v5 }
 0x60a   :  { %2889 = vmatprep.subr.mxu1 %v3350_v10 }
 0x60b   :  { %2890 = vmatpush3.msra.mxu1 %v3814_v17 }
 0x60c   :  { %2891 = vmatprep.subr.mxu1 %v3350_v10 }
 0x60d   :  { %2892 = vmatpush3.msra.mxu1 %v3821_v20 }
 0x60e   :  { %2893 = vmatprep.subr.mxu1 %v3350_v10 }
 0x60f   :  { %2894 = vmatpush3.msra.mxu1 %v3828_v23 }
 0x610   :  { %2898 = vmatprep.subr.mxu1 %v3350_v10 }
 0x6c0   :  { %v1120_v26 = vpop.f32.mrf.mxu1 }
 0x6c2   :  { %v2875_v35 = vpop.f32.mrf.mxu1 }
 0x6c8   :  { %v1193_v36 = vpop.f32.mrf.mxu1 }
 0x6c9   :  { %v1194_v37 = vadd.f32 %v1193_v36, %v1120_v26 }
 0x6ca   :  { %v2886_v38 = vpop.f32.mrf.mxu1 }
 0x6cb   :  { %v1197_v39 = vadd.f32 %v1194_v37, %v3561_v44 }
 0x6cd   :  { %3205 = vtanh.f32 %v1197_v39 }
 0x6da   :  { %v3206_v40 = vpop.eup %3205 }
 0x6db   :  { %2896 = vmatmul.mubr.msk.f32.vlgmr.msra.gmra.mxu1 %vm285_vm3, %v3206_v40  ;;  %2942 = vmatmul.mubr.msk.f32.vlgmr.msra.gmra.mxu0 %vm285_vm3, %v3206_v40 }
 0x6dc   :  { %2899 = vmatpush3.msra.mxu1 %v3617_v6  ;;  %2930 = vmatprep.mubr.msk.f32.mxu1 %vm3351_vm2, %v3350_v10 }
 0x6dd   :  { %2900 = vmatprep.subr.mxu1 %v3350_v10  ;;  %2945 = vmatpush3.msra.mxu0 %v3475_v7 }
 0x6de   :  { %2901 = vmatpush3.msra.mxu1 %v3623_v16  ;;  %2946 = vmatprep.subr.mxu0 %v3350_v10 }
 0x6df   :  { %2902 = vmatprep.subr.mxu1 %v3350_v10  ;;  %2947 = vmatpush3.msra.mxu0 %v3482_v8 }
 0x6e0   :  { %2903 = vmatpush3.msra.mxu1 %v3635_v18  ;;  %2948 = vmatprep.subr.mxu0 %v3350_v10 }
 0x6e1   :  { %2904 = vmatprep.subr.mxu1 %v3350_v10  ;;  %2949 = vmatpush3.msra.mxu0 %v3501_v12 }
 0x6e2   :  { %2905 = vmatpush3.msra.mxu1 %v3642_v19  ;;  %2950 = vmatprep.subr.mxu0 %v3350_v10 }
 0x6e3   :  { %2906 = vmatprep.subr.mxu1 %v3350_v10  ;;  %2951 = vmatpush3.msra.mxu0 %v3510_v13 }
 0x6e4   :  { %2907 = vmatpush3.msra.mxu1 %v3655_v21  ;;  %2952 = vmatprep.mubr.msk.f32.mxu0 %vm3351_vm2, %v3350_v10 }
 0x6e5   :  { %2908 = vmatprep.subr.mxu1 %v3350_v10  ;;  %2955 = vmatprep.subr.mxu0 %v3350_v10 }
 0x6e6   :  { %2909 = vmatpush3.msra.mxu1 %v3662_v22 }
 0x6e7   :  { %2910 = vmatprep.subr.mxu1 %v3350_v10 }
 0x6e8   :  { %2911 = vmatpush3.msra.mxu1 %v3675_v24 }
 0x6e9   :  { %2912 = vmatprep.subr.mxu1 %v3350_v10 }
 0x6ea   :  { %2913 = vmatpush3.msra.mxu1 %v3682_v25 }
 0x6eb   :  { %2914 = vmatprep.subr.mxu1 %v3350_v10 }
 0x6ec   :  { %2915 = vmatpush3.msra.mxu1 %v3695_v27 }
 0x6ed   :  { %2916 = vmatprep.subr.mxu1 %v3350_v10 }
 0x6ee   :  { %2917 = vmatpush3.msra.mxu1 %v3702_v28 }
 0x6ef   :  { %2918 = vmatprep.subr.mxu1 %v3350_v10 }
 0x6f0   :  { %2919 = vmatpush3.msra.mxu1 %v3712_v29 }
 0x6f1   :  { %2920 = vmatprep.subr.mxu1 %v3350_v10 }
 0x6f2   :  { %2921 = vmatpush3.msra.mxu1 %v3719_v30 }
 0x6f3   :  { %2922 = vmatprep.subr.mxu1 %v3350_v10 }
 0x6f4   :  { %2923 = vmatpush3.msra.mxu1 %v3726_v31 }
 0x6f5   :  { %2924 = vmatprep.subr.mxu1 %v3350_v10 }
 0x6f6   :  { %2925 = vmatpush3.msra.mxu1 %v3733_v32 }
 0x6f7   :  { %2926 = vmatprep.subr.mxu1 %v3350_v10 }
 0x6f8   :  { %2927 = vmatpush3.msra.mxu1 %v3740_v33 }
 0x6f9   :  { %2928 = vmatprep.subr.mxu1 %v3350_v10 }
 0x6fa   :  { %2929 = vmatpush3.msra.mxu1 %v3747_v34 }
 0x6fb   :  { %3001 = vmatprep.subr.mxu1 %v3350_v10 }
 0x79b   :  { %v1274_v42 = vpop.f32.mrf.mxu1  ;;  %v1418_v43 = vpop.f32.mrf.mxu0 }
 0x79c   :  { %v1275_v46 = vadd.f32 %v3884_v41, %v1274_v42 }
 0x79d   :  { %v2897_v47 = vpop.f32.mrf.mxu1  ;;  %v2943_v49 = vpop.f32.mrf.mxu0 }
 0x79e   :  { %3207 = vtanh.f32 %v1275_v46  ;;  %v3233_v46 = vld [vmem:[%s4152_s11 + $0x18] sm:$0xff]  ;;  %v3234_v47 = vld [vmem:[%s4152_s11 + $0x10] sm:$0xff] }
 0x7ab   :  { %v3208_v50 = vpop.eup %3207 }
 0x7ac   :  { %1279 = vst [vmem:[%s4156_s15] sm:$0xff] %v3208_v50  ;;  %2931 = vmatmul.mubr.f32.vlgmr.msra.gmra.mxu1 %v3208_v50 }
 0x7ad   :  { %3002 = vmatpush3.msra.mxu1 %v3487_v9  ;;  %3009 = vmatprep.mubr.msk.f32.mxu1 %vm3351_vm2, %v3350_v10 }
 0x7ae   :  { %3003 = vmatprep.subr.mxu1 %v3350_v10 }
 0x7af   :  { %3004 = vmatpush3.msra.mxu1 %v3494_v11 }
 0x7b0   :  { %3005 = vmatprep.subr.mxu1 %v3350_v10 }
 0x7b1   :  { %3006 = vmatpush3.msra.mxu1 %v3521_v14 }
 0x7b2   :  { %3007 = vmatprep.subr.mxu1 %v3350_v10 }
 0x7b3   :  { %3008 = vmatpush3.msra.mxu1 %v3528_v15 }
 0x7b4   :  { %3012 = vmatprep.subr.mxu1 %v3350_v10 }
 0x86c   :  { %v1346_v53 = vpop.f32.mrf.mxu1 }
 0x86d   :  { %v1347_v54 = vadd.f32 %v3787_v58, %v1346_v53 }
 0x86e   :  { %v2932_v55 = vpop.f32.mrf.mxu1 }
 0x86f   :  { %v1350_v57 = vadd.f32 %v1347_v54, %v3768_v45 }
 0x871   :  { %3209 = vtanh.f32 %v1350_v57 }
 0x87e   :  { %v3210_v59 = vpop.eup %3209 }
 0x87f   :  { %2953 = vmatmul.mubr.msk.f32.vlgmr.msra.gmra.mxu0 %vm285_vm3, %v3210_v59 }
 0x880   :  { %2956 = vmatpush3.msra.mxu0 %v3809_v5  ;;  %2963 = vmatprep.mubr.msk.f32.mxu0 %vm3351_vm2, %v3350_v10 }
 0x881   :  { %2957 = vmatprep.subr.mxu0 %v3350_v10 }
 0x882   :  { %2958 = vmatpush3.msra.mxu0 %v3814_v17 }
 0x883   :  { %2959 = vmatprep.subr.mxu0 %v3350_v10 }
 0x884   :  { %2960 = vmatpush3.msra.mxu0 %v3821_v20 }
 0x885   :  { %2961 = vmatprep.subr.mxu0 %v3350_v10 }
 0x886   :  { %2962 = vmatpush3.msra.mxu0 %v3828_v23 }
 0x887   :  { %2966 = vmatprep.subr.mxu0 %v3350_v10 }
 0x93f   :  { %v1491_v45 = vpop.f32.mrf.mxu0 }
 0x940   :  { %v1492_v60 = vadd.f32 %v1491_v45, %v1418_v43  ;;  %v3235_v45 = vld [vmem:[%s4150_s9 + $0x18] sm:$0xff] }
 0x941   :  { %v2954_v61 = vpop.f32.mrf.mxu0 }
 0x942   :  { %v1495_v62 = vadd.f32 %v1492_v60, %v3561_v44  ;;  %v3237_v60 = vld [vmem:[%s4150_s9 + $0x8] sm:$0xff] }
 0x944   :  { %3211 = vtanh.f32 %v1495_v62 }
 0x951   :  { %v3212_v63 = vpop.eup %3211 }
 0x952   :  { %2964 = vmatmul.mubr.msk.f32.vlgmr.msra.gmra.mxu0 %vm285_vm3, %v3212_v63  ;;  %3010 = vmatmul.mubr.msk.f32.vlgmr.msra.gmra.mxu1 %vm285_vm3, %v3212_v63 }
 0x953   :  { %2967 = vmatpush3.msra.mxu0 %v3617_v6  ;;  %2998 = vmatprep.mubr.msk.f32.mxu0 %vm3351_vm2, %v3350_v10 }
 0x954   :  { %2968 = vmatprep.subr.mxu0 %v3350_v10  ;;  %3013 = vmatpush3.msra.mxu1 %v3475_v7 }
 0x955   :  { %2969 = vmatpush3.msra.mxu0 %v3623_v16  ;;  %3014 = vmatprep.subr.mxu1 %v3350_v10 }
 0x956   :  { %2970 = vmatprep.subr.mxu0 %v3350_v10  ;;  %3015 = vmatpush3.msra.mxu1 %v3482_v8 }
 0x957   :  { %2971 = vmatpush3.msra.mxu0 %v3635_v18  ;;  %3016 = vmatprep.subr.mxu1 %v3350_v10 }
 0x958   :  { %2972 = vmatprep.subr.mxu0 %v3350_v10  ;;  %3017 = vmatpush3.msra.mxu1 %v3501_v12 }
 0x959   :  { %2973 = vmatpush3.msra.mxu0 %v3642_v19  ;;  %3018 = vmatprep.subr.mxu1 %v3350_v10 }
 0x95a   :  { %2974 = vmatprep.subr.mxu0 %v3350_v10  ;;  %3019 = vmatpush3.msra.mxu1 %v3510_v13 }
 0x95b   :  { %2975 = vmatpush3.msra.mxu0 %v3655_v21  ;;  %3020 = vmatprep.mubr.msk.f32.mxu1 %vm3351_vm2, %v3350_v10 }
 0x95c   :  { %2976 = vmatprep.subr.mxu0 %v3350_v10  ;;  %3023 = vmatprep.subr.mxu1 %v3350_v10 }
 0x95d   :  { %2977 = vmatpush3.msra.mxu0 %v3662_v22 }
 0x95e   :  { %2978 = vmatprep.subr.mxu0 %v3350_v10 }
 0x95f   :  { %2979 = vmatpush3.msra.mxu0 %v3675_v24 }
 0x960   :  { %2980 = vmatprep.subr.mxu0 %v3350_v10 }
 0x961   :  { %2981 = vmatpush3.msra.mxu0 %v3682_v25 }
 0x962   :  { %2982 = vmatprep.subr.mxu0 %v3350_v10 }
 0x963   :  { %2983 = vmatpush3.msra.mxu0 %v3695_v27 }
 0x964   :  { %2984 = vmatprep.subr.mxu0 %v3350_v10 }
 0x965   :  { %2985 = vmatpush3.msra.mxu0 %v3702_v28 }
 0x966   :  { %2986 = vmatprep.subr.mxu0 %v3350_v10 }
 0x967   :  { %2987 = vmatpush3.msra.mxu0 %v3712_v29 }
 0x968   :  { %2988 = vmatprep.subr.mxu0 %v3350_v10 }
 0x969   :  { %2989 = vmatpush3.msra.mxu0 %v3719_v30 }
 0x96a   :  { %2990 = vmatprep.subr.mxu0 %v3350_v10 }
 0x96b   :  { %2991 = vmatpush3.msra.mxu0 %v3726_v31 }
 0x96c   :  { %2992 = vmatprep.subr.mxu0 %v3350_v10 }
 0x96d   :  { %2993 = vmatpush3.msra.mxu0 %v3733_v32 }
 0x96e   :  { %2994 = vmatprep.subr.mxu0 %v3350_v10 }
 0x96f   :  { %2995 = vmatpush3.msra.mxu0 %v3740_v33 }
 0x970   :  { %2996 = vmatprep.subr.mxu0 %v3350_v10 }
 0x971   :  { %2997 = vmatpush3.msra.mxu0 %v3747_v34 }
 0x972   :  { %3069 = vmatprep.subr.mxu0 %v3350_v10 }
 0xa12   :  { %v1566_v0 = vpop.f32.mrf.mxu0  ;;  %v1711_v1 = vpop.f32.mrf.mxu1 }
 0xa13   :  { %v1567_v2 = vadd.f32 %v3884_v41, %v1566_v0 }
 0xa14   :  { %v2965_v3 = vpop.f32.mrf.mxu0  ;;  %v3011_v4 = vpop.f32.mrf.mxu1 }
 0xa15   :  { %3213 = vtanh.f32 %v1567_v2 }
 0xa22   :  { %v3214_v51 = vpop.eup %3213 }
 0xa23   :  { %2493 = vst [vmem:[%s4156_s15 + $0x8] sm:$0xff] %v3214_v51  ;;  %2999 = vmatmul.mubr.f32.vlgmr.msra.gmra.mxu0 %v3214_v51 }
 0xa24   :  { %3070 = vmatpush3.msra.mxu0 %v3487_v9  ;;  %3077 = vmatprep.mubr.msk.f32.mxu0 %vm3351_vm2, %v3350_v10 }
 0xa25   :  { %3071 = vmatprep.subr.mxu0 %v3350_v10 }
 0xa26   :  { %3072 = vmatpush3.msra.mxu0 %v3494_v11 }
 0xa27   :  { %3073 = vmatprep.subr.mxu0 %v3350_v10 }
 0xa28   :  { %3074 = vmatpush3.msra.mxu0 %v3521_v14 }
 0xa29   :  { %3075 = vmatprep.subr.mxu0 %v3350_v10 }
 0xa2a   :  { %3076 = vmatpush3.msra.mxu0 %v3528_v15 }
 0xa2b   :  { %3080 = vmatprep.subr.mxu0 %v3350_v10 }
 0xae3   :  { %v1639_v26 = vpop.f32.mrf.mxu0 }
 0xae4   :  { %v1640_v9 = vadd.f32 %v3787_v58, %v1639_v26 }
 0xae5   :  { %v3000_v35 = vpop.f32.mrf.mxu0 }
 0xae6   :  { %v1643_v36 = vadd.f32 %v1640_v9, %v3770_v48 }
 0xae8   :  { %3215 = vtanh.f32 %v1643_v36 }
 0xaf5   :  { %v3216_v37 = vpop.eup %3215 }
 0xaf6   :  { %3021 = vmatmul.mubr.msk.f32.vlgmr.msra.gmra.mxu1 %vm285_vm3, %v3216_v37 }
 0xaf7   :  { %3024 = vmatpush3.msra.mxu1 %v3809_v5  ;;  %3031 = vmatprep.mubr.msk.f32.mxu1 %vm3351_vm2, %v3350_v10 }
 0xaf8   :  { %3025 = vmatprep.subr.mxu1 %v3350_v10 }
 0xaf9   :  { %3026 = vmatpush3.msra.mxu1 %v3814_v17 }
 0xafa   :  { %3027 = vmatprep.subr.mxu1 %v3350_v10 }
 0xafb   :  { %3028 = vmatpush3.msra.mxu1 %v3821_v20 }
 0xafc   :  { %3029 = vmatprep.subr.mxu1 %v3350_v10 }
 0xafd   :  { %3030 = vmatpush3.msra.mxu1 %v3828_v23 }
 0xafe   :  { %3034 = vmatprep.subr.mxu1 %v3350_v10 }
 0xbb6   :  { %v1784_v11 = vpop.f32.mrf.mxu1 }
 0xbb7   :  { %v1785_v48 = vadd.f32 %v1784_v11, %v1711_v1 }
 0xbb8   :  { %v3022_v38 = vpop.f32.mrf.mxu1 }
 0xbb9   :  { %v1788_v39 = vadd.f32 %v1785_v48, %v3561_v44 }
 0xbbb   :  { %3217 = vtanh.f32 %v1788_v39 }
 0xbc8   :  { %v3218_v40 = vpop.eup %3217 }
 0xbc9   :  { %3032 = vmatmul.mubr.msk.f32.vlgmr.msra.gmra.mxu1 %vm285_vm3, %v3218_v40  ;;  %3078 = vmatmul.mubr.msk.f32.vlgmr.msra.gmra.mxu0 %vm285_vm3, %v3218_v40 }
 0xbca   :  { %3035 = vmatpush3.msra.mxu1 %v3617_v6  ;;  %3066 = vmatprep.mubr.msk.f32.mxu1 %vm3351_vm2, %v3350_v10 }
 0xbcb   :  { %3036 = vmatprep.subr.mxu1 %v3350_v10  ;;  %3081 = vmatpush3.msra.mxu0 %v3475_v7 }
 0xbcc   :  { %3037 = vmatpush3.msra.mxu1 %v3623_v16  ;;  %3082 = vmatprep.subr.mxu0 %v3350_v10 }
 0xbcd   :  { %3038 = vmatprep.subr.mxu1 %v3350_v10  ;;  %3083 = vmatpush3.msra.mxu0 %v3482_v8 }
 0xbce   :  { %3039 = vmatpush3.msra.mxu1 %v3635_v18  ;;  %3084 = vmatprep.subr.mxu0 %v3350_v10 }
 0xbcf   :  { %3040 = vmatprep.subr.mxu1 %v3350_v10  ;;  %3085 = vmatpush3.msra.mxu0 %v3501_v12 }
 0xbd0   :  { %3041 = vmatpush3.msra.mxu1 %v3642_v19  ;;  %3086 = vmatprep.subr.mxu0 %v3350_v10 }
 0xbd1   :  { %3042 = vmatprep.subr.mxu1 %v3350_v10  ;;  %3087 = vmatpush3.msra.mxu0 %v3510_v13 }
 0xbd2   :  { %3043 = vmatpush3.msra.mxu1 %v3655_v21  ;;  %3088 = vmatprep.mubr.msk.f32.mxu0 %vm3351_vm2, %v3350_v10 }
 0xbd3   :  { %3044 = vmatprep.subr.mxu1 %v3350_v10  ;;  %3091 = vmatprep.subr.mxu0 %v3350_v10 }
 0xbd4   :  { %3045 = vmatpush3.msra.mxu1 %v3662_v22 }
 0xbd5   :  { %3046 = vmatprep.subr.mxu1 %v3350_v10 }
 0xbd6   :  { %3047 = vmatpush3.msra.mxu1 %v3675_v24 }
 0xbd7   :  { %3048 = vmatprep.subr.mxu1 %v3350_v10 }
 0xbd8   :  { %3049 = vmatpush3.msra.mxu1 %v3682_v25 }
 0xbd9   :  { %3050 = vmatprep.subr.mxu1 %v3350_v10 }
 0xbda   :  { %3051 = vmatpush3.msra.mxu1 %v3695_v27 }
 0xbdb   :  { %3052 = vmatprep.subr.mxu1 %v3350_v10 }
 0xbdc   :  { %3053 = vmatpush3.msra.mxu1 %v3702_v28 }
 0xbdd   :  { %3054 = vmatprep.subr.mxu1 %v3350_v10 }
 0xbde   :  { %3055 = vmatpush3.msra.mxu1 %v3712_v29 }
 0xbdf   :  { %3056 = vmatprep.subr.mxu1 %v3350_v10 }
 0xbe0   :  { %3057 = vmatpush3.msra.mxu1 %v3719_v30 }
 0xbe1   :  { %3058 = vmatprep.subr.mxu1 %v3350_v10 }
 0xbe2   :  { %3059 = vmatpush3.msra.mxu1 %v3726_v31 }
 0xbe3   :  { %3060 = vmatprep.subr.mxu1 %v3350_v10 }
 0xbe4   :  { %3061 = vmatpush3.msra.mxu1 %v3733_v32 }
 0xbe5   :  { %3062 = vmatprep.subr.mxu1 %v3350_v10 }
 0xbe6   :  { %3063 = vmatpush3.msra.mxu1 %v3740_v33 }
 0xbe7   :  { %3064 = vmatprep.subr.mxu1 %v3350_v10 }
 0xbe8   :  { %3065 = vmatpush3.msra.mxu1 %v3747_v34 }
 0xbe9   :  { %3137 = vmatprep.subr.mxu1 %v3350_v10 }
 0xc89   :  { %v1859_v7 = vpop.f32.mrf.mxu1  ;;  %v2004_v8 = vpop.f32.mrf.mxu0 }
 0xc8a   :  { %v1860_v12 = vadd.f32 %v3884_v41, %v1859_v7 }
 0xc8b   :  { %v3033_v13 = vpop.f32.mrf.mxu1  ;;  %v3079_v42 = vpop.f32.mrf.mxu0 }
 0xc8c   :  { %3219 = vtanh.f32 %v1860_v12 }
 0xc99   :  { %v3220_v43 = vpop.eup %3219 }
 0xc9a   :  { %2497 = vst [vmem:[%s4156_s15 + $0x10] sm:$0xff] %v3220_v43  ;;  %3067 = vmatmul.mubr.f32.vlgmr.msra.gmra.mxu1 %v3220_v43 }
 0xc9b   :  { %3138 = vmatpush3.msra.mxu1 %v3233_v46  ;;  %3145 = vmatprep.mubr.msk.f32.mxu1 %vm3351_vm2, %v3350_v10 }
 0xc9c   :  { %3139 = vmatprep.subr.mxu1 %v3350_v10 }
 0xc9d   :  { %3140 = vmatpush3.msra.mxu1 %v3234_v47 }
 0xc9e   :  { %3141 = vmatprep.subr.mxu1 %v3350_v10 }
 0xc9f   :  { %3142 = vmatpush3.msra.mxu1 %v3521_v14 }
 0xca0   :  { %3143 = vmatprep.subr.mxu1 %v3350_v10 }
 0xca1   :  { %3144 = vmatpush3.msra.mxu1 %v3528_v15 }
 0xca2   :  { %3148 = vmatprep.subr.mxu1 %v3350_v10 }
 0xd5a   :  { %v1932_v49 = vpop.f32.mrf.mxu1 }
 0xd5b   :  { %v1933_v50 = vadd.f32 %v3787_v58, %v1932_v49 }
 0xd5c   :  { %v3068_v53 = vpop.f32.mrf.mxu1 }
 0xd5d   :  { %v1936_v54 = vadd.f32 %v1933_v50, %v3773_v52 }
 0xd5f   :  { %3221 = vtanh.f32 %v1936_v54 }
 0xd6c   :  { %v3222_v55 = vpop.eup %3221 }
 0xd6d   :  { %3089 = vmatmul.mubr.msk.f32.vlgmr.msra.gmra.mxu0 %vm285_vm3, %v3222_v55 }
 0xd6e   :  { %3092 = vmatpush3.msra.mxu0 %v3809_v5  ;;  %3099 = vmatprep.mubr.msk.f32.mxu0 %vm3351_vm2, %v3350_v10 }
 0xd6f   :  { %3093 = vmatprep.subr.mxu0 %v3350_v10 }
 0xd70   :  { %3094 = vmatpush3.msra.mxu0 %v3814_v17 }
 0xd71   :  { %3095 = vmatprep.subr.mxu0 %v3350_v10 }
 0xd72   :  { %3096 = vmatpush3.msra.mxu0 %v3821_v20 }
 0xd73   :  { %3097 = vmatprep.subr.mxu0 %v3350_v10 }
 0xd74   :  { %3098 = vmatpush3.msra.mxu0 %v3828_v23 }
 0xd75   :  { %3102 = vmatprep.subr.mxu0 %v3350_v10 }
 0xe2d   :  { %v2077_v14 = vpop.f32.mrf.mxu0 }
 0xe2e   :  { %v2078_v15 = vadd.f32 %v2077_v14, %v2004_v8 }
 0xe2f   :  { %v3090_v52 = vpop.f32.mrf.mxu0 }
 0xe30   :  { %v2081_v57 = vadd.f32 %v2078_v15, %v3561_v44 }
 0xe32   :  { %3223 = vtanh.f32 %v2081_v57 }
 0xe3f   :  { %v3224_v59 = vpop.eup %3223 }
 0xe40   :  { %3100 = vmatmul.mubr.msk.f32.vlgmr.msra.gmra.mxu0 %vm285_vm3, %v3224_v59  ;;  %3146 = vmatmul.mubr.msk.f32.vlgmr.msra.gmra.mxu1 %vm285_vm3, %v3224_v59 }
 0xe41   :  { %3103 = vmatpush3.msra.mxu0 %v3617_v6  ;;  %3134 = vmatprep.mubr.msk.f32.mxu0 %vm3351_vm2, %v3350_v10  ;;  %v3236_v6 = vld [vmem:[%s4150_s9 + $0x10] sm:$0xff] }
 0xe42   :  { %3104 = vmatprep.subr.mxu0 %v3350_v10  ;;  %3149 = vmatpush3.msra.mxu1 %v3235_v45 }
 0xe43   :  { %3105 = vmatpush3.msra.mxu0 %v3623_v16  ;;  %3150 = vmatprep.subr.mxu1 %v3350_v10  ;;  %v3238_v16 = vld [vmem:[%s4150_s9] sm:$0xff] }
 0xe44   :  { %3106 = vmatprep.subr.mxu0 %v3350_v10  ;;  %3151 = vmatpush3.msra.mxu1 %v3236_v6 }
 0xe45   :  { %3107 = vmatpush3.msra.mxu0 %v3635_v18  ;;  %3152 = vmatprep.subr.mxu1 %v3350_v10 }
 0xe46   :  { %3108 = vmatprep.subr.mxu0 %v3350_v10  ;;  %3153 = vmatpush3.msra.mxu1 %v3237_v60 }
 0xe47   :  { %3109 = vmatpush3.msra.mxu0 %v3642_v19  ;;  %3154 = vmatprep.subr.mxu1 %v3350_v10 }
 0xe48   :  { %3110 = vmatprep.subr.mxu0 %v3350_v10  ;;  %3155 = vmatpush3.msra.mxu1 %v3238_v16 }
 0xe49   :  { %3111 = vmatpush3.msra.mxu0 %v3655_v21  ;;  %3156 = vmatprep.mubr.msk.f32.mxu1 %vm3351_vm2, %v3350_v10 }
 0xe4a   :  { %3112 = vmatprep.subr.mxu0 %v3350_v10  ;;  %3159 = vmatprep.subr.mxu1 %v3350_v10 }
 0xe4b   :  { %3113 = vmatpush3.msra.mxu0 %v3662_v22 }
 0xe4c   :  { %3114 = vmatprep.subr.mxu0 %v3350_v10 }
 0xe4d   :  { %3115 = vmatpush3.msra.mxu0 %v3675_v24 }
 0xe4e   :  { %3116 = vmatprep.subr.mxu0 %v3350_v10 }
 0xe4f   :  { %3117 = vmatpush3.msra.mxu0 %v3682_v25 }
 0xe50   :  { %3118 = vmatprep.subr.mxu0 %v3350_v10 }
 0xe51   :  { %3119 = vmatpush3.msra.mxu0 %v3695_v27 }
 0xe52   :  { %3120 = vmatprep.subr.mxu0 %v3350_v10 }
 0xe53   :  { %3121 = vmatpush3.msra.mxu0 %v3702_v28 }
 0xe54   :  { %3122 = vmatprep.subr.mxu0 %v3350_v10 }
 0xe55   :  { %3123 = vmatpush3.msra.mxu0 %v3712_v29 }
 0xe56   :  { %3124 = vmatprep.subr.mxu0 %v3350_v10 }
 0xe57   :  { %3125 = vmatpush3.msra.mxu0 %v3719_v30 }
 0xe58   :  { %3126 = vmatprep.subr.mxu0 %v3350_v10 }
 0xe59   :  { %3127 = vmatpush3.msra.mxu0 %v3726_v31 }
 0xe5a   :  { %3128 = vmatprep.subr.mxu0 %v3350_v10 }
 0xe5b   :  { %3129 = vmatpush3.msra.mxu0 %v3733_v32 }
 0xe5c   :  { %3130 = vmatprep.subr.mxu0 %v3350_v10 }
 0xe5d   :  { %3131 = vmatpush3.msra.mxu0 %v3740_v33 }
 0xe5e   :  { %3132 = vmatprep.subr.mxu0 %v3350_v10 }
 0xe5f   :  { %3133 = vmatpush3.msra.mxu0 %v3747_v34 }
 0xf00   :  { %v2152_v18 = vpop.f32.mrf.mxu0  ;;  %v2297_v19 = vpop.f32.mrf.mxu1 }
 0xf01   :  { %v2153_v21 = vadd.f32 %v3884_v41, %v2152_v18 }
 0xf02   :  { %v3101_v22 = vpop.f32.mrf.mxu0  ;;  %v3147_v24 = vpop.f32.mrf.mxu1 }
 0xf03   :  { %3225 = vtanh.f32 %v2153_v21 }
 0xf10   :  { %v3226_v25 = vpop.eup %3225 }
 0xf11   :  { %2501 = vst [vmem:[%s4156_s15 + $0x18] sm:$0xff] %v3226_v25  ;;  %3135 = vmatmul.mubr.f32.vlgmr.msra.gmra.mxu0 %v3226_v25 }
 0xfd1   :  { %v2225_v27 = vpop.f32.mrf.mxu0 }
 0xfd2   :  { %v2226_v28 = vadd.f32 %v3787_v58, %v2225_v27 }
 0xfd3   :  { %v3136_v29 = vpop.f32.mrf.mxu0 }
 0xfd4   :  { %v2229_v30 = vadd.f32 %v2226_v28, %v3780_v56 }
 0xfd6   :  { %3227 = vtanh.f32 %v2229_v30 }
 0xfe3   :  { %v3228_v31 = vpop.eup %3227 }
 0xfe4   :  { %3157 = vmatmul.mubr.msk.f32.vlgmr.msra.gmra.mxu1 %vm285_vm3, %v3228_v31 }
 0xfe5   :  { %3160 = vmatpush3.msra.mxu1 %v3809_v5  ;;  %3167 = vmatprep.mubr.msk.f32.mxu1 %vm3351_vm2, %v3350_v10 }
 0xfe6   :  { %3161 = vmatprep.subr.mxu1 %v3350_v10 }
 0xfe7   :  { %3162 = vmatpush3.msra.mxu1 %v3814_v17 }
 0xfe8   :  { %3163 = vmatprep.subr.mxu1 %v3350_v10 }
 0xfe9   :  { %3164 = vmatpush3.msra.mxu1 %v3821_v20 }
 0xfea   :  { %3165 = vmatprep.subr.mxu1 %v3350_v10 }
 0xfeb   :  { %3166 = vmatpush3.msra.mxu1 %v3828_v23 }
0x10a4   :  { %v2370_v32 = vpop.f32.mrf.mxu1 }
0x10a5   :  { %v2371_v33 = vadd.f32 %v2370_v32, %v2297_v19 }
0x10a6   :  { %v3158_v34 = vpop.f32.mrf.mxu1 }
0x10a7   :  { %v2374_v56 = vadd.f32 %v2371_v33, %v3561_v44 }
0x10a9   :  { %3229 = vtanh.f32 %v2374_v56 }
0x10b6   :  { %v3230_v58 = vpop.eup %3229 }
0x10b7   :  { %3168 = vmatmul.mubr.msk.f32.vlgmr.msra.gmra.mxu1 %vm285_vm3, %v3230_v58 }
0x1177   :  { %v2445_v5 = vpop.f32.mrf.mxu1 }
0x1178   :  { %v2446_v17 = vadd.f32 %v3884_v41, %v2445_v5 }
0x1179   :  { %v3169_v61 = vpop.f32.mrf.mxu1 }
0x117a   :  { %3231 = vtanh.f32 %v2446_v17 }
0x1187   :  { %v3232_v62 = vpop.eup %3231 }
0x1188   :  { %2505 = vst [vmem:[%s4156_s15 + $0x20] sm:$0xff] %v3232_v62 }
0x1189   :  { %2456 = vsyncpa [#allocation3], 1 }
0x118a   :  { %2457 = vsyncpa [#allocation5], 1 }
0x118b   :  { %2458 = vsyncpa [#allocation8], 1 }

</bundles_post_ra>
